<compile_context>
chip_gen: v6e
topology: v6e:2x2x1
jax: 0.10.0
libtpu: 0.0.40
codegen_flags: <defaults>
</compile_context>

<pallas_src>
import functools
import math

import numpy as np
import jax
import jax.numpy as jnp
from jax.experimental import pallas as pl
from jax.experimental.pallas import tpu as pltpu


_LAYER_CFG = (
    # (cin, cout, stride, pre-upsample factor)
    (3, 16, 2, 1),    # encoder conv1 + ReLU
    (16, 8, 2, 1),    # encoder conv2 + ReLU
    (8, 8, 1, 2),     # nearest-2x upsample + decoder conv1 + ReLU
    (8, 16, 1, 2),    # nearest-2x upsample + decoder conv2 + ReLU
    (16, 3, 1, 1),    # decoder conv3 + Sigmoid
)
_N_LAYERS = len(_LAYER_CFG)


def _round_up(x, m):
    return ((x + m - 1) // m) * m


def _pad_channels(c, w):
    """Smallest c' >= c such that (w * c') % 128 == 0 (lane-dense layout)."""
    return _round_up(c, 128 // math.gcd(w, 128))


# ----------------------------------------------------------------------------
# Pallas kernel: the entire forward pass for one image.
#   refs = (x_ref, [L_ref, M_ref, B_ref] * 5, o_ref, t_scratch)
# Per layer:  u = L_cat @ a ;  T = lane-restack(u) ;  y = act(T @ M_cat + b)
# ----------------------------------------------------------------------------
def _denoise_kernel(*refs):
    x_ref = refs[0]
    op_refs = refs[1:1 + 3 * _N_LAYERS]
    o_ref = refs[1 + 3 * _N_LAYERS]
    t_ref = refs[2 + 3 * _N_LAYERS]          # VMEM scratch (max_hp, max 3*W*Cin)

    a = x_ref[0]                              # (Hin_pad, W*Cin_pad) f32
    for i in range(_N_LAYERS):
        l_ref = op_refs[3 * i + 0]            # (3*Hp, Hin_pad)      f32 (0/1)
        m_ref = op_refs[3 * i + 1]            # (3*W*Cin, W*Cout)    bf16
        b_ref = op_refs[3 * i + 2]            # (1, W*Cout)          f32
        hp = l_ref.shape[0] // 3              # padded output rows (mult of 8)
        wci = m_ref.shape[0] // 3             # input lane width (mult of 128)

        # Vertical taps + stride + nearest-2x upsample + zero pad: one stacked
        # 0/1 matmul producing the three dy row-blocks at once.
        u = jnp.dot(l_ref[...], a, preferred_element_type=jnp.float32)

        # Restack the dy blocks side by side along the lane axis (all offsets
        # 128-aligned, all row counts 8-aligned -> unmasked stores).
        for dy in range(3):
            t_ref[0:hp, dy * wci:(dy + 1) * wci] = u[dy * hp:(dy + 1) * hp, :]

        # Horizontal taps + Cin->Cout mixing + dy sum in one MXU pass,
        # K = 3*W*Cin, bf16 inputs, f32 accumulation.
        acc = jnp.dot(t_ref[0:hp, 0:3 * wci].astype(jnp.bfloat16), m_ref[...],
                      preferred_element_type=jnp.float32)
        acc = acc + b_ref[...]

        if i < _N_LAYERS - 1:
            a = jnp.maximum(acc, 0.0)                                 # ReLU (VPU)
        else:
            # sigmoid via EUP exp + approx reciprocal (clamped at 1.0).
            a = jnp.minimum(pl.reciprocal(1.0 + jnp.exp(-acc), approx=True), 1.0)

    o_ref[0] = a[:o_ref.shape[1], :]          # (Hdec, Wdec*Cout_pad)


# ----------------------------------------------------------------------------
# Host-side operator construction (done once, outside jit).
# ----------------------------------------------------------------------------
def _build_layer_ops(w, b, hin, win, hin_pad, cin_pad, stride, up):
    """Fold nearest-`up` upsample + 3x3 conv(stride, pad=1) into L/M/B mats."""
    k = np.asarray(w, dtype=np.float32)              # (3, 3, cin, cout)
    bias = np.asarray(b, dtype=np.float32)           # (cout,)
    cin, cout = k.shape[2], k.shape[3]
    hu, wu = hin * up, win * up
    hout = (hu + 2 - 3) // stride + 1
    wout = (wu + 2 - 3) // stride + 1
    hp = _round_up(hout, 8)                          # sublane-padded rows
    cout_pad = _pad_channels(cout, wout)             # lane-dense channels

    L = np.zeros((3, hp, hin_pad), np.float32)
    M = np.zeros((3, win * cin_pad, wout * cout_pad), np.float32)
    B = np.zeros((1, wout * cout_pad), np.float32)
    for dy in range(3):
        for y in range(hout):
            yu = stride * y + dy - 1                 # row in upsampled coords
            if 0 <= yu < hu:                         # else: zero padding
                L[dy, y, yu // up] = 1.0
        for x in range(wout):
            for dx in range(3):
                xu = stride * x + dx - 1             # col in upsampled coords
                if 0 <= xu < wu:
                    xi = xu // up
                    M[dy, xi * cin_pad:xi * cin_pad + cin,
                          x * cout_pad:x * cout_pad + cout] += k[dy, dx]
    for x in range(wout):
        B[0, x * cout_pad:x * cout_pad + cout] = bias   # padded channels: 0 bias

    L_cat = jnp.asarray(L.reshape(3 * hp, hin_pad))                   # f32 0/1
    M_cat = jnp.asarray(M.reshape(3 * win * cin_pad,
                                  wout * cout_pad)).astype(jnp.bfloat16)
    return (L_cat, M_cat, jnp.asarray(B)), (hout, wout, hp, cout_pad)


def init_params(key):
    """PyTorch-default-style uniform init; weights stored as (3,3,Cin,Cout)."""
    params = []
    keys = jax.random.split(key, _N_LAYERS)
    for kk, (cin, cout, _, _) in zip(keys, _LAYER_CFG):
        k1, k2 = jax.random.split(kk)
        bound = 1.0 / float(np.sqrt(cin * 9))
        w = jax.random.uniform(k1, (3, 3, cin, cout), jnp.float32, -bound, bound)
        b = jax.random.uniform(k2, (cout,), jnp.float32, -bound, bound)
        params.append((w, b))
    return params


def prepare_operators(params, height, width):
    """Lower every (upsample+)conv layer into static, lane-padded operators."""
    ops = []
    h, w = height, width
    hin_pad = height
    cin_pad0 = _pad_channels(_LAYER_CFG[0][0], width)
    cin_pad = cin_pad0
    for (wgt, bias), cfg in zip(params, _LAYER_CFG):
        stride, up = cfg[2], cfg[3]
        (L, M, B), (h, w, hp, cout_pad) = _build_layer_ops(
            wgt, bias, h, w, hin_pad, cin_pad, stride, up)
        ops.extend([L, M, B])
        hin_pad, cin_pad = hp, cout_pad
    meta = (h, w, cin_pad, cin_pad0)   # (Hdec, Wdec, final Cout_pad, input Cin_pad)
    return tuple(ops), meta


# ----------------------------------------------------------------------------
# Forward pass (matches torch Denoise.forward).
# ----------------------------------------------------------------------------
def denoise_forward(ops, meta, x_nchw):
    n, cin, h, w = x_nchw.shape
    hd, wd, cout_pad, cin_pad = meta
    cout = _LAYER_CFG[-1][1]

    # NCHW -> lane-dense per-image (H, W*Cin_pad) matrix (boundary-only glue).
    x_nhwc = jnp.transpose(x_nchw, (0, 2, 3, 1))
    if cin_pad != cin:
        x_nhwc = jnp.pad(x_nhwc, ((0, 0), (0, 0), (0, 0), (0, cin_pad - cin)))
    x2d = x_nhwc.reshape(n, h, w * cin_pad)

    in_specs = [pl.BlockSpec((1, h, w * cin_pad), lambda b: (b, 0, 0))]
    for op in ops:
        in_specs.append(pl.BlockSpec(op.shape, lambda b: (0, 0)))
    out_specs = pl.BlockSpec((1, hd, wd * cout_pad), lambda b: (b, 0, 0))

    max_hp = max(op.shape[0] // 3 for op in ops[0::3])
    max_k = max(op.shape[0] for op in ops[1::3])

    y2d = pl.pallas_call(
        _denoise_kernel,
        out_shape=jax.ShapeDtypeStruct((n, hd, wd * cout_pad), jnp.float32),
        grid=(n,),
        in_specs=in_specs,
        out_specs=out_specs,
        scratch_shapes=[pltpu.VMEM((max_hp, max_k), jnp.float32)],
        compiler_params=pltpu.CompilerParams(
            dimension_semantics=("parallel",)),
    )(x2d, *ops)

    # Drop padded channels, back to NCHW.
    y = jnp.transpose(y2d.reshape(n, hd, wd, cout_pad)[..., :cout], (0, 3, 1, 2))

    if (hd, wd) != (h, w):
        # Matches F.interpolate(mode='bilinear', align_corners=False);
        # only reached when H or W is not divisible by 4.
        # TODO(synk): bilinear resize fallback stays in plain JAX.
        y = jax.image.resize(y, (n, cout, h, w), method="bilinear")
    return y


if __name__ == "__main__":
    key = jax.random.PRNGKey(0)
    pkey, xkey = jax.random.split(key)

    params = init_params(pkey)
    H = W = 16
    ops, meta = prepare_operators(params, H, W)

    # Input consistent with the module: NCHW, 3 channels.
    x = jax.random.uniform(xkey, (2, 3, H, W), jnp.float32)

    fwd = jax.jit(functools.partial(denoise_forward, ops, meta))
    out = jax.block_until_ready(fwd(x))

    assert out.shape == (2, 3, H, W), out.shape
    assert out.dtype == jnp.float32
    assert bool(jnp.all(jnp.isfinite(out)))
    # sigmoid output range sanity check
    assert bool(jnp.all(out >= 0.0)) and bool(jnp.all(out <= 1.0))
    print("KERNEL_OK")
</pallas_src>

<mosaic_0001>
module attributes {stable_mosaic.version = 11 : i64} {
  func.func @_denoise_kernel(%arg0: i32, %arg1: memref<1x16x128xf32, #tpu.memory_space<vmem>>, %arg2: memref<24x16xf32, #tpu.memory_space<vmem>>, %arg3: memref<384x128xbf16, #tpu.memory_space<vmem>>, %arg4: memref<1x128xf32, #tpu.memory_space<vmem>>, %arg5: memref<24x8xf32, #tpu.memory_space<vmem>>, %arg6: memref<384x128xbf16, #tpu.memory_space<vmem>>, %arg7: memref<1x128xf32, #tpu.memory_space<vmem>>, %arg8: memref<24x8xf32, #tpu.memory_space<vmem>>, %arg9: memref<384x128xbf16, #tpu.memory_space<vmem>>, %arg10: memref<1x128xf32, #tpu.memory_space<vmem>>, %arg11: memref<48x8xf32, #tpu.memory_space<vmem>>, %arg12: memref<384x256xbf16, #tpu.memory_space<vmem>>, %arg13: memref<1x256xf32, #tpu.memory_space<vmem>>, %arg14: memref<48x16xf32, #tpu.memory_space<vmem>>, %arg15: memref<768x128xbf16, #tpu.memory_space<vmem>>, %arg16: memref<1x128xf32, #tpu.memory_space<vmem>>, %arg17: memref<1x16x128xf32, #tpu.memory_space<vmem>>, %arg18: memref<16x768xf32, #tpu.memory_space<vmem>>) attributes {dimension_semantics = [#tpu.dimension_semantics<parallel>], iteration_bounds = array<i64: 2>, scalar_prefetch = 0 : i64, scratch_operands = 1 : i64, tpu.core_type = #tpu.core_type<tc>, window_params = [{transform_indices = @transform_0, window_bounds = array<i64: 1, 16, 128>}, {pipeline_mode = #tpu.pipeline_mode<synchronous>, transform_indices = @transform_1, window_bounds = array<i64: 24, 16>}, {pipeline_mode = #tpu.pipeline_mode<synchronous>, transform_indices = @transform_2, window_bounds = array<i64: 384, 128>}, {pipeline_mode = #tpu.pipeline_mode<synchronous>, transform_indices = @transform_3, window_bounds = array<i64: 1, 128>}, {pipeline_mode = #tpu.pipeline_mode<synchronous>, transform_indices = @transform_4, window_bounds = array<i64: 24, 8>}, {pipeline_mode = #tpu.pipeline_mode<synchronous>, transform_indices = @transform_5, window_bounds = array<i64: 384, 128>}, {pipeline_mode = #tpu.pipeline_mode<synchronous>, transform_indices = @transform_6, window_bounds = array<i64: 1, 128>}, {pipeline_mode = #tpu.pipeline_mode<synchronous>, transform_indices = @transform_7, window_bounds = array<i64: 24, 8>}, {pipeline_mode = #tpu.pipeline_mode<synchronous>, transform_indices = @transform_8, window_bounds = array<i64: 384, 128>}, {pipeline_mode = #tpu.pipeline_mode<synchronous>, transform_indices = @transform_9, window_bounds = array<i64: 1, 128>}, {pipeline_mode = #tpu.pipeline_mode<synchronous>, transform_indices = @transform_10, window_bounds = array<i64: 48, 8>}, {pipeline_mode = #tpu.pipeline_mode<synchronous>, transform_indices = @transform_11, window_bounds = array<i64: 384, 256>}, {pipeline_mode = #tpu.pipeline_mode<synchronous>, transform_indices = @transform_12, window_bounds = array<i64: 1, 256>}, {pipeline_mode = #tpu.pipeline_mode<synchronous>, transform_indices = @transform_13, window_bounds = array<i64: 48, 16>}, {pipeline_mode = #tpu.pipeline_mode<synchronous>, transform_indices = @transform_14, window_bounds = array<i64: 768, 128>}, {pipeline_mode = #tpu.pipeline_mode<synchronous>, transform_indices = @transform_15, window_bounds = array<i64: 1, 128>}, {transform_indices = @transform_16, window_bounds = array<i64: 1, 16, 128>}]} {
    %c0 = arith.constant 0 : index
    %c0_0 = arith.constant 0 : index
    %c0_1 = arith.constant 0 : index
    %0 = vector.load %arg1[%c0, %c0_0, %c0_1] : memref<1x16x128xf32, #tpu.memory_space<vmem>>, vector<1x16x128xf32>
    %1 = vector.shape_cast %0 : vector<1x16x128xf32> to vector<16x128xf32>
    %c0_2 = arith.constant 0 : index
    %c0_3 = arith.constant 0 : index
    %2 = vector.load %arg2[%c0_2, %c0_3] : memref<24x16xf32, #tpu.memory_space<vmem>>, vector<24x16xf32>
    %cst = arith.constant dense<0.000000e+00> : vector<24x128xf32>
    %3 = tpu.matmul %2, %1, %cst {dimension_numbers = #tpu.dot_dimension_numbers<[1], [0], [0], [1], [0, 0, 1, 1], [], []>} : vector<24x16xf32>, vector<16x128xf32>, vector<24x128xf32> -> vector<24x128xf32>
    %4 = vector.extract_strided_slice %3 {offsets = [0, 0], sizes = [8, 128], strides = [1, 1]} : vector<24x128xf32> to vector<8x128xf32>
    %c0_4 = arith.constant 0 : index
    %c0_5 = arith.constant 0 : index
    %5 = vector.load %arg18[%c0_4, %c0_5] : memref<16x768xf32, #tpu.memory_space<vmem>>, vector<8x128xf32>
    tpu.vector_store %arg18[%c0_4, %c0_5], %4 {strides = array<i32>} : memref<16x768xf32, #tpu.memory_space<vmem>>, vector<8x128xf32>,
    %6 = vector.extract_strided_slice %3 {offsets = [8, 0], sizes = [8, 128], strides = [1, 1]} : vector<24x128xf32> to vector<8x128xf32>
    %c0_6 = arith.constant 0 : index
    %c128 = arith.constant 128 : index
    %7 = vector.load %arg18[%c0_6, %c128] : memref<16x768xf32, #tpu.memory_space<vmem>>, vector<8x128xf32>
    tpu.vector_store %arg18[%c0_6, %c128], %6 {strides = array<i32>} : memref<16x768xf32, #tpu.memory_space<vmem>>, vector<8x128xf32>,
    %8 = vector.extract_strided_slice %3 {offsets = [16, 0], sizes = [8, 128], strides = [1, 1]} : vector<24x128xf32> to vector<8x128xf32>
    %c0_7 = arith.constant 0 : index
    %c256 = arith.constant 256 : index
    %9 = vector.load %arg18[%c0_7, %c256] : memref<16x768xf32, #tpu.memory_space<vmem>>, vector<8x128xf32>
    tpu.vector_store %arg18[%c0_7, %c256], %8 {strides = array<i32>} : memref<16x768xf32, #tpu.memory_space<vmem>>, vector<8x128xf32>,
    %c0_8 = arith.constant 0 : index
    %c0_9 = arith.constant 0 : index
    %10 = vector.load %arg18[%c0_8, %c0_9] : memref<16x768xf32, #tpu.memory_space<vmem>>, vector<8x384xf32>
    %11 = arith.truncf %10 : vector<8x384xf32> to vector<8x384xbf16>
    %c0_10 = arith.constant 0 : index
    %c0_11 = arith.constant 0 : index
    %12 = vector.load %arg3[%c0_10, %c0_11] : memref<384x128xbf16, #tpu.memory_space<vmem>>, vector<384x128xbf16>
    %cst_12 = arith.constant dense<0.000000e+00> : vector<8x128xf32>
    %13 = tpu.matmul %11, %12, %cst_12 {dimension_numbers = #tpu.dot_dimension_numbers<[1], [0], [0], [1], [0, 0, 1, 1], [], []>} : vector<8x384xbf16>, vector<384x128xbf16>, vector<8x128xf32> -> vector<8x128xf32>
    %c0_13 = arith.constant 0 : index
    %c0_14 = arith.constant 0 : index
    %14 = vector.load %arg4[%c0_13, %c0_14] : memref<1x128xf32, #tpu.memory_space<vmem>>, vector<1x128xf32>
    %15 = vector.broadcast %14 : vector<1x128xf32> to vector<8x128xf32>
    %16 = arith.addf %13, %15 : vector<8x128xf32>
    %cst_15 = arith.constant 0.000000e+00 : f32
    %17 = vector.broadcast %cst_15 : f32 to vector<8x128xf32>
    %18 = arith.maximumf %16, %17 : vector<8x128xf32>
    %c0_16 = arith.constant 0 : index
    %c0_17 = arith.constant 0 : index
    %19 = vector.load %arg5[%c0_16, %c0_17] : memref<24x8xf32, #tpu.memory_space<vmem>>, vector<24x8xf32>
    %cst_18 = arith.constant dense<0.000000e+00> : vector<24x128xf32>
    %20 = tpu.matmul %19, %18, %cst_18 {dimension_numbers = #tpu.dot_dimension_numbers<[1], [0], [0], [1], [0, 0, 1, 1], [], []>} : vector<24x8xf32>, vector<8x128xf32>, vector<24x128xf32> -> vector<24x128xf32>
    %21 = vector.extract_strided_slice %20 {offsets = [0, 0], sizes = [8, 128], strides = [1, 1]} : vector<24x128xf32> to vector<8x128xf32>
    %c0_19 = arith.constant 0 : index
    %c0_20 = arith.constant 0 : index
    %22 = vector.load %arg18[%c0_19, %c0_20] : memref<16x768xf32, #tpu.memory_space<vmem>>, vector<8x128xf32>
    tpu.vector_store %arg18[%c0_19, %c0_20], %21 {strides = array<i32>} : memref<16x768xf32, #tpu.memory_space<vmem>>, vector<8x128xf32>,
    %23 = vector.extract_strided_slice %20 {offsets = [8, 0], sizes = [8, 128], strides = [1, 1]} : vector<24x128xf32> to vector<8x128xf32>
    %c0_21 = arith.constant 0 : index
    %c128_22 = arith.constant 128 : index
    %24 = vector.load %arg18[%c0_21, %c128_22] : memref<16x768xf32, #tpu.memory_space<vmem>>, vector<8x128xf32>
    tpu.vector_store %arg18[%c0_21, %c128_22], %23 {strides = array<i32>} : memref<16x768xf32, #tpu.memory_space<vmem>>, vector<8x128xf32>,
    %25 = vector.extract_strided_slice %20 {offsets = [16, 0], sizes = [8, 128], strides = [1, 1]} : vector<24x128xf32> to vector<8x128xf32>
    %c0_23 = arith.constant 0 : index
    %c256_24 = arith.constant 256 : index
    %26 = vector.load %arg18[%c0_23, %c256_24] : memref<16x768xf32, #tpu.memory_space<vmem>>, vector<8x128xf32>
    tpu.vector_store %arg18[%c0_23, %c256_24], %25 {strides = array<i32>} : memref<16x768xf32, #tpu.memory_space<vmem>>, vector<8x128xf32>,
    %c0_25 = arith.constant 0 : index
    %c0_26 = arith.constant 0 : index
    %27 = vector.load %arg18[%c0_25, %c0_26] : memref<16x768xf32, #tpu.memory_space<vmem>>, vector<8x384xf32>
    %28 = arith.truncf %27 : vector<8x384xf32> to vector<8x384xbf16>
    %c0_27 = arith.constant 0 : index
    %c0_28 = arith.constant 0 : index
    %29 = vector.load %arg6[%c0_27, %c0_28] : memref<384x128xbf16, #tpu.memory_space<vmem>>, vector<384x128xbf16>
    %cst_29 = arith.constant dense<0.000000e+00> : vector<8x128xf32>
    %30 = tpu.matmul %28, %29, %cst_29 {dimension_numbers = #tpu.dot_dimension_numbers<[1], [0], [0], [1], [0, 0, 1, 1], [], []>} : vector<8x384xbf16>, vector<384x128xbf16>, vector<8x128xf32> -> vector<8x128xf32>
    %c0_30 = arith.constant 0 : index
    %c0_31 = arith.constant 0 : index
    %31 = vector.load %arg7[%c0_30, %c0_31] : memref<1x128xf32, #tpu.memory_space<vmem>>, vector<1x128xf32>
    %32 = vector.broadcast %31 : vector<1x128xf32> to vector<8x128xf32>
    %33 = arith.addf %30, %32 : vector<8x128xf32>
    %cst_32 = arith.constant 0.000000e+00 : f32
    %34 = vector.broadcast %cst_32 : f32 to vector<8x128xf32>
    %35 = arith.maximumf %33, %34 : vector<8x128xf32>
    %c0_33 = arith.constant 0 : index
    %c0_34 = arith.constant 0 : index
    %36 = vector.load %arg8[%c0_33, %c0_34] : memref<24x8xf32, #tpu.memory_space<vmem>>, vector<24x8xf32>
    %cst_35 = arith.constant dense<0.000000e+00> : vector<24x128xf32>
    %37 = tpu.matmul %36, %35, %cst_35 {dimension_numbers = #tpu.dot_dimension_numbers<[1], [0], [0], [1], [0, 0, 1, 1], [], []>} : vector<24x8xf32>, vector<8x128xf32>, vector<24x128xf32> -> vector<24x128xf32>
    %38 = vector.extract_strided_slice %37 {offsets = [0, 0], sizes = [8, 128], strides = [1, 1]} : vector<24x128xf32> to vector<8x128xf32>
    %c0_36 = arith.constant 0 : index
    %c0_37 = arith.constant 0 : index
    %39 = vector.load %arg18[%c0_36, %c0_37] : memref<16x768xf32, #tpu.memory_space<vmem>>, vector<8x128xf32>
    tpu.vector_store %arg18[%c0_36, %c0_37], %38 {strides = array<i32>} : memref<16x768xf32, #tpu.memory_space<vmem>>, vector<8x128xf32>,
    %40 = vector.extract_strided_slice %37 {offsets = [8, 0], sizes = [8, 128], strides = [1, 1]} : vector<24x128xf32> to vector<8x128xf32>
    %c0_38 = arith.constant 0 : index
    %c128_39 = arith.constant 128 : index
    %41 = vector.load %arg18[%c0_38, %c128_39] : memref<16x768xf32, #tpu.memory_space<vmem>>, vector<8x128xf32>
    tpu.vector_store %arg18[%c0_38, %c128_39], %40 {strides = array<i32>} : memref<16x768xf32, #tpu.memory_space<vmem>>, vector<8x128xf32>,
    %42 = vector.extract_strided_slice %37 {offsets = [16, 0], sizes = [8, 128], strides = [1, 1]} : vector<24x128xf32> to vector<8x128xf32>
    %c0_40 = arith.constant 0 : index
    %c256_41 = arith.constant 256 : index
    %43 = vector.load %arg18[%c0_40, %c256_41] : memref<16x768xf32, #tpu.memory_space<vmem>>, vector<8x128xf32>
    tpu.vector_store %arg18[%c0_40, %c256_41], %42 {strides = array<i32>} : memref<16x768xf32, #tpu.memory_space<vmem>>, vector<8x128xf32>,
    %c0_42 = arith.constant 0 : index
    %c0_43 = arith.constant 0 : index
    %44 = vector.load %arg18[%c0_42, %c0_43] : memref<16x768xf32, #tpu.memory_space<vmem>>, vector<8x384xf32>
    %45 = arith.truncf %44 : vector<8x384xf32> to vector<8x384xbf16>
    %c0_44 = arith.constant 0 : index
    %c0_45 = arith.constant 0 : index
    %46 = vector.load %arg9[%c0_44, %c0_45] : memref<384x128xbf16, #tpu.memory_space<vmem>>, vector<384x128xbf16>
    %cst_46 = arith.constant dense<0.000000e+00> : vector<8x128xf32>
    %47 = tpu.matmul %45, %46, %cst_46 {dimension_numbers = #tpu.dot_dimension_numbers<[1], [0], [0], [1], [0, 0, 1, 1], [], []>} : vector<8x384xbf16>, vector<384x128xbf16>, vector<8x128xf32> -> vector<8x128xf32>
    %c0_47 = arith.constant 0 : index
    %c0_48 = arith.constant 0 : index
    %48 = vector.load %arg10[%c0_47, %c0_48] : memref<1x128xf32, #tpu.memory_space<vmem>>, vector<1x128xf32>
    %49 = vector.broadcast %48 : vector<1x128xf32> to vector<8x128xf32>
    %50 = arith.addf %47, %49 : vector<8x128xf32>
    %cst_49 = arith.constant 0.000000e+00 : f32
    %51 = vector.broadcast %cst_49 : f32 to vector<8x128xf32>
    %52 = arith.maximumf %50, %51 : vector<8x128xf32>
    %c0_50 = arith.constant 0 : index
    %c0_51 = arith.constant 0 : index
    %53 = vector.load %arg11[%c0_50, %c0_51] : memref<48x8xf32, #tpu.memory_space<vmem>>, vector<48x8xf32>
    %cst_52 = arith.constant dense<0.000000e+00> : vector<48x128xf32>
    %54 = tpu.matmul %53, %52, %cst_52 {dimension_numbers = #tpu.dot_dimension_numbers<[1], [0], [0], [1], [0, 0, 1, 1], [], []>} : vector<48x8xf32>, vector<8x128xf32>, vector<48x128xf32> -> vector<48x128xf32>
    %55 = vector.extract_strided_slice %54 {offsets = [0, 0], sizes = [16, 128], strides = [1, 1]} : vector<48x128xf32> to vector<16x128xf32>
    %c0_53 = arith.constant 0 : index
    %c0_54 = arith.constant 0 : index
    %56 = vector.load %arg18[%c0_53, %c0_54] : memref<16x768xf32, #tpu.memory_space<vmem>>, vector<16x128xf32>
    tpu.vector_store %arg18[%c0_53, %c0_54], %55 {strides = array<i32>} : memref<16x768xf32, #tpu.memory_space<vmem>>, vector<16x128xf32>,
    %57 = vector.extract_strided_slice %54 {offsets = [16, 0], sizes = [16, 128], strides = [1, 1]} : vector<48x128xf32> to vector<16x128xf32>
    %c0_55 = arith.constant 0 : index
    %c128_56 = arith.constant 128 : index
    %58 = vector.load %arg18[%c0_55, %c128_56] : memref<16x768xf32, #tpu.memory_space<vmem>>, vector<16x128xf32>
    tpu.vector_store %arg18[%c0_55, %c128_56], %57 {strides = array<i32>} : memref<16x768xf32, #tpu.memory_space<vmem>>, vector<16x128xf32>,
    %59 = vector.extract_strided_slice %54 {offsets = [32, 0], sizes = [16, 128], strides = [1, 1]} : vector<48x128xf32> to vector<16x128xf32>
    %c0_57 = arith.constant 0 : index
    %c256_58 = arith.constant 256 : index
    %60 = vector.load %arg18[%c0_57, %c256_58] : memref<16x768xf32, #tpu.memory_space<vmem>>, vector<16x128xf32>
    tpu.vector_store %arg18[%c0_57, %c256_58], %59 {strides = array<i32>} : memref<16x768xf32, #tpu.memory_space<vmem>>, vector<16x128xf32>,
    %c0_59 = arith.constant 0 : index
    %c0_60 = arith.constant 0 : index
    %61 = vector.load %arg18[%c0_59, %c0_60] : memref<16x768xf32, #tpu.memory_space<vmem>>, vector<16x384xf32>
    %62 = arith.truncf %61 : vector<16x384xf32> to vector<16x384xbf16>
    %c0_61 = arith.constant 0 : index
    %c0_62 = arith.constant 0 : index
    %63 = vector.load %arg12[%c0_61, %c0_62] : memref<384x256xbf16, #tpu.memory_space<vmem>>, vector<384x256xbf16>
    %cst_63 = arith.constant dense<0.000000e+00> : vector<16x256xf32>
    %64 = tpu.matmul %62, %63, %cst_63 {dimension_numbers = #tpu.dot_dimension_numbers<[1], [0], [0], [1], [0, 0, 1, 1], [], []>} : vector<16x384xbf16>, vector<384x256xbf16>, vector<16x256xf32> -> vector<16x256xf32>
    %c0_64 = arith.constant 0 : index
    %c0_65 = arith.constant 0 : index
    %65 = vector.load %arg13[%c0_64, %c0_65] : memref<1x256xf32, #tpu.memory_space<vmem>>, vector<1x256xf32>
    %66 = vector.broadcast %65 : vector<1x256xf32> to vector<16x256xf32>
    %67 = arith.addf %64, %66 : vector<16x256xf32>
    %cst_66 = arith.constant 0.000000e+00 : f32
    %68 = vector.broadcast %cst_66 : f32 to vector<16x256xf32>
    %69 = arith.maximumf %67, %68 : vector<16x256xf32>
    %c0_67 = arith.constant 0 : index
    %c0_68 = arith.constant 0 : index
    %70 = vector.load %arg14[%c0_67, %c0_68] : memref<48x16xf32, #tpu.memory_space<vmem>>, vector<48x16xf32>
    %cst_69 = arith.constant dense<0.000000e+00> : vector<48x256xf32>
    %71 = tpu.matmul %70, %69, %cst_69 {dimension_numbers = #tpu.dot_dimension_numbers<[1], [0], [0], [1], [0, 0, 1, 1], [], []>} : vector<48x16xf32>, vector<16x256xf32>, vector<48x256xf32> -> vector<48x256xf32>
    %72 = vector.extract_strided_slice %71 {offsets = [0, 0], sizes = [16, 256], strides = [1, 1]} : vector<48x256xf32> to vector<16x256xf32>
    %c0_70 = arith.constant 0 : index
    %c0_71 = arith.constant 0 : index
    %73 = vector.load %arg18[%c0_70, %c0_71] : memref<16x768xf32, #tpu.memory_space<vmem>>, vector<16x256xf32>
    tpu.vector_store %arg18[%c0_70, %c0_71], %72 {strides = array<i32>} : memref<16x768xf32, #tpu.memory_space<vmem>>, vector<16x256xf32>,
    %74 = vector.extract_strided_slice %71 {offsets = [16, 0], sizes = [16, 256], strides = [1, 1]} : vector<48x256xf32> to vector<16x256xf32>
    %c0_72 = arith.constant 0 : index
    %c256_73 = arith.constant 256 : index
    %75 = vector.load %arg18[%c0_72, %c256_73] : memref<16x768xf32, #tpu.memory_space<vmem>>, vector<16x256xf32>
    tpu.vector_store %arg18[%c0_72, %c256_73], %74 {strides = array<i32>} : memref<16x768xf32, #tpu.memory_space<vmem>>, vector<16x256xf32>,
    %76 = vector.extract_strided_slice %71 {offsets = [32, 0], sizes = [16, 256], strides = [1, 1]} : vector<48x256xf32> to vector<16x256xf32>
    %c0_74 = arith.constant 0 : index
    %c512 = arith.constant 512 : index
    %77 = vector.load %arg18[%c0_74, %c512] : memref<16x768xf32, #tpu.memory_space<vmem>>, vector<16x256xf32>
    tpu.vector_store %arg18[%c0_74, %c512], %76 {strides = array<i32>} : memref<16x768xf32, #tpu.memory_space<vmem>>, vector<16x256xf32>,
    %c0_75 = arith.constant 0 : index
    %c0_76 = arith.constant 0 : index
    %78 = vector.load %arg18[%c0_75, %c0_76] : memref<16x768xf32, #tpu.memory_space<vmem>>, vector<16x768xf32>
    %79 = arith.truncf %78 : vector<16x768xf32> to vector<16x768xbf16>
    %c0_77 = arith.constant 0 : index
    %c0_78 = arith.constant 0 : index
    %80 = vector.load %arg15[%c0_77, %c0_78] : memref<768x128xbf16, #tpu.memory_space<vmem>>, vector<768x128xbf16>
    %cst_79 = arith.constant dense<0.000000e+00> : vector<16x128xf32>
    %81 = tpu.matmul %79, %80, %cst_79 {dimension_numbers = #tpu.dot_dimension_numbers<[1], [0], [0], [1], [0, 0, 1, 1], [], []>} : vector<16x768xbf16>, vector<768x128xbf16>, vector<16x128xf32> -> vector<16x128xf32>
    %c0_80 = arith.constant 0 : index
    %c0_81 = arith.constant 0 : index
    %82 = vector.load %arg16[%c0_80, %c0_81] : memref<1x128xf32, #tpu.memory_space<vmem>>, vector<1x128xf32>
    %83 = vector.broadcast %82 : vector<1x128xf32> to vector<16x128xf32>
    %84 = arith.addf %81, %83 : vector<16x128xf32>
    %cst_82 = arith.constant 0.000000e+00 : f32
    %85 = vector.broadcast %cst_82 : f32 to vector<16x128xf32>
    %86 = arith.subf %85, %84 : vector<16x128xf32>
    %87 = math.exp %86 : vector<16x128xf32>
    %cst_83 = arith.constant 1.000000e+00 : f32
    %88 = vector.broadcast %cst_83 : f32 to vector<16x128xf32>
    %89 = arith.addf %88, %87 : vector<16x128xf32>
    %90 = tpu.reciprocal %89 {approx = true} : vector<16x128xf32> -> vector<16x128xf32>
    %cst_84 = arith.constant 1.000000e+00 : f32
    %91 = vector.broadcast %cst_84 : f32 to vector<16x128xf32>
    %92 = arith.minimumf %90, %91 : vector<16x128xf32>
    %c0_85 = arith.constant 0 : index
    %c0_86 = arith.constant 0 : index
    %c0_87 = arith.constant 0 : index
    %93 = vector.load %arg17[%c0_85, %c0_86, %c0_87] : memref<1x16x128xf32, #tpu.memory_space<vmem>>, vector<1x16x128xf32>
    %94 = vector.shape_cast %93 : vector<1x16x128xf32> to vector<16x128xf32>
    %95 = vector.shape_cast %92 : vector<16x128xf32> to vector<1x16x128xf32>
    tpu.vector_store %arg17[%c0_85, %c0_86, %c0_87], %95 {strides = array<i32>} : memref<1x16x128xf32, #tpu.memory_space<vmem>>, vector<1x16x128xf32>,
    return
  }
  func.func @transform_0(%arg0: i32) -> (i32, i32, i32) {
    %c0_i32 = arith.constant 0 : i32
    %c0_i32_0 = arith.constant 0 : i32
    %c0_i32_1 = arith.constant 0 : i32
    return %arg0, %c0_i32, %c0_i32_0 : i32, i32, i32
  }
  func.func @transform_1(%arg0: i32) -> (i32, i32) {
    %c0_i32 = arith.constant 0 : i32
    %c0_i32_0 = arith.constant 0 : i32
    %c0_i32_1 = arith.constant 0 : i32
    return %c0_i32, %c0_i32_0 : i32, i32
  }
  func.func @transform_2(%arg0: i32) -> (i32, i32) {
    %c0_i32 = arith.constant 0 : i32
    %c0_i32_0 = arith.constant 0 : i32
    %c0_i32_1 = arith.constant 0 : i32
    return %c0_i32, %c0_i32_0 : i32, i32
  }
  func.func @transform_3(%arg0: i32) -> (i32, i32) {
    %c0_i32 = arith.constant 0 : i32
    %c0_i32_0 = arith.constant 0 : i32
    %c0_i32_1 = arith.constant 0 : i32
    return %c0_i32, %c0_i32_0 : i32, i32
  }
  func.func @transform_4(%arg0: i32) -> (i32, i32) {
    %c0_i32 = arith.constant 0 : i32
    %c0_i32_0 = arith.constant 0 : i32
    %c0_i32_1 = arith.constant 0 : i32
    return %c0_i32, %c0_i32_0 : i32, i32
  }
  func.func @transform_5(%arg0: i32) -> (i32, i32) {
    %c0_i32 = arith.constant 0 : i32
    %c0_i32_0 = arith.constant 0 : i32
    %c0_i32_1 = arith.constant 0 : i32
    return %c0_i32, %c0_i32_0 : i32, i32
  }
  func.func @transform_6(%arg0: i32) -> (i32, i32) {
    %c0_i32 = arith.constant 0 : i32
    %c0_i32_0 = arith.constant 0 : i32
    %c0_i32_1 = arith.constant 0 : i32
    return %c0_i32, %c0_i32_0 : i32, i32
  }
  func.func @transform_7(%arg0: i32) -> (i32, i32) {
    %c0_i32 = arith.constant 0 : i32
    %c0_i32_0 = arith.constant 0 : i32
    %c0_i32_1 = arith.constant 0 : i32
    return %c0_i32, %c0_i32_0 : i32, i32
  }
  func.func @transform_8(%arg0: i32) -> (i32, i32) {
    %c0_i32 = arith.constant 0 : i32
    %c0_i32_0 = arith.constant 0 : i32
    %c0_i32_1 = arith.constant 0 : i32
    return %c0_i32, %c0_i32_0 : i32, i32
  }
  func.func @transform_9(%arg0: i32) -> (i32, i32) {
    %c0_i32 = arith.constant 0 : i32
    %c0_i32_0 = arith.constant 0 : i32
    %c0_i32_1 = arith.constant 0 : i32
    return %c0_i32, %c0_i32_0 : i32, i32
  }
  func.func @transform_10(%arg0: i32) -> (i32, i32) {
    %c0_i32 = arith.constant 0 : i32
    %c0_i32_0 = arith.constant 0 : i32
    %c0_i32_1 = arith.constant 0 : i32
    return %c0_i32, %c0_i32_0 : i32, i32
  }
  func.func @transform_11(%arg0: i32) -> (i32, i32) {
    %c0_i32 = arith.constant 0 : i32
    %c0_i32_0 = arith.constant 0 : i32
    %c0_i32_1 = arith.constant 0 : i32
    return %c0_i32, %c0_i32_0 : i32, i32
  }
  func.func @transform_12(%arg0: i32) -> (i32, i32) {
    %c0_i32 = arith.constant 0 : i32
    %c0_i32_0 = arith.constant 0 : i32
    %c0_i32_1 = arith.constant 0 : i32
    return %c0_i32, %c0_i32_0 : i32, i32
  }
  func.func @transform_13(%arg0: i32) -> (i32, i32) {
    %c0_i32 = arith.constant 0 : i32
    %c0_i32_0 = arith.constant 0 : i32
    %c0_i32_1 = arith.constant 0 : i32
    return %c0_i32, %c0_i32_0 : i32, i32
  }
  func.func @transform_14(%arg0: i32) -> (i32, i32) {
    %c0_i32 = arith.constant 0 : i32
    %c0_i32_0 = arith.constant 0 : i32
    %c0_i32_1 = arith.constant 0 : i32
    return %c0_i32, %c0_i32_0 : i32, i32
  }
  func.func @transform_15(%arg0: i32) -> (i32, i32) {
    %c0_i32 = arith.constant 0 : i32
    %c0_i32_0 = arith.constant 0 : i32
    %c0_i32_1 = arith.constant 0 : i32
    return %c0_i32, %c0_i32_0 : i32, i32
  }
  func.func @transform_16(%arg0: i32) -> (i32, i32, i32) {
    %c0_i32 = arith.constant 0 : i32
    %c0_i32_0 = arith.constant 0 : i32
    %c0_i32_1 = arith.constant 0 : i32
    return %arg0, %c0_i32, %c0_i32_0 : i32, i32, i32
  }
}

</mosaic_0001>

<bundles_post_ra>
// kernel: denoise_forward.1
= control target key start
LH: loop header
LB: loop body
LE: loop exit
PB: predicated region body
PF: predicated region fallthrough
CT: control target
= control target key end

     0   :  { %s4615_s0 = inlined_call_operand.vmem [shape: f32[2,16,128], index: 0, kind: input, shape index: {}]   ;;  %s4616_s1 = inlined_call_operand.hbm [shape: f32[24,16], index: 1, kind: input, shape index: {}]   ;;  %s4617_s2 = inlined_call_operand.hbm [shape: bf16[384,128], index: 2, kind: input, shape index: {}]   ;;  %s4618_s3 = inlined_call_operand.vmem [shape: f32[1,128], index: 3, kind: input, shape index: {}]   ;;  %s4619_s4 = inlined_call_operand.hbm [shape: f32[24,8], index: 4, kind: input, shape index: {}]   ;;  %s4620_s5 = inlined_call_operand.hbm [shape: bf16[384,128], index: 5, kind: input, shape index: {}]   ;;  %s4621_s6 = inlined_call_operand.vmem [shape: f32[1,128], index: 6, kind: input, shape index: {}]   ;;  %s4622_s7 = inlined_call_operand.vmem [shape: f32[24,8], index: 7, kind: input, shape index: {}]   ;;  %s4623_s8 = inlined_call_operand.hbm [shape: bf16[384,128], index: 8, kind: input, shape index: {}]   ;;  %s4624_s9 = inlined_call_operand.vmem [shape: f32[1,128], index: 9, kind: input, shape index: {}]   ;;  %s4625_s10 = inlined_call_operand.vmem [shape: f32[48,8], index: 10, kind: input, shape index: {}]   ;;  %s4626_s11 = inlined_call_operand.vmem [shape: bf16[384,256], index: 11, kind: input, shape index: {}]   ;;  %s4627_s12 = inlined_call_operand.vmem [shape: f32[1,256], index: 12, kind: input, shape index: {}]   ;;  %s4628_s13 = inlined_call_operand.vmem [shape: f32[48,16], index: 13, kind: input, shape index: {}]   ;;  %s4629_s14 = inlined_call_operand.vmem [shape: bf16[768,128], index: 14, kind: input, shape index: {}]   ;;  %s4630_s15 = inlined_call_operand.vmem [shape: f32[1,128], index: 15, kind: input, shape index: {}]   ;;  %s4631_s16 = inlined_call_operand.vmem [shape: f32[2,16,128], index: 16, kind: output, shape index: {}]  }
   0x1   :  { %4636 = sst [smem:[#allocation14_spill]] %s4615_s0 }
   0x2   :  { %4637 = sst [smem:[#allocation15_spill]] %s4616_s1 }
   0x3   :  { %21 = vsyncpa [#allocation4], 0 }
   0x4   :  { %22 = vsyncpa [#allocation6], 0 }
   0x5   :  { %23 = vsyncpa [#allocation9], 0  ;;  %s4069_s21 = smov 0  }
   0x6 LB: > { %s3972_s22 = smov [#allocation5]   ;;  %s4075_s24 = sadd.s32 4294967295, %s3970_s21   ;;  %s3970_s21 = sphi %s4069_s21, %s29_s21  }
   0x7   : > { %s426_s23 = sshll.u32 %s3972_s22, 4  ;;  %p3057_p0 = scmp.ge.s32.totalorder %s3970_s21, 1  ;;  %s427_s23 = int_to_ptr.vmem [resolvable:$true] %s426_s23 }
   0x8   : > { %p401_p1 = scmp.lt.s32.totalorder %s3970_s21, 3  ;;  %p4634_p2 = scmp.eq.s32.totalorder %s4075_s24, 0 }
   0x9   : > { %s3973_s26 = smov [#allocation8]   ;;  %s3974_s29 = smov [#allocation3]  }
   0xa   : > { %p4080_p3 = pnand %p3057_p0, %p401_p1  ;;  %s455_s27 = sshll.u32 %s3973_s26, 4  ;;  %s4086_s27 = int_to_ptr.vmem [resolvable:$true] %s455_s27 }
   0xb   : > { %s413_s30 = sshll.u32 %s3974_s29, 4  ;;  %s3833_s17 = scalar_lea.vmem %s427_s23, 3072  ;;  %s4094_s30 = int_to_ptr.vmem [resolvable:$true] %s413_s30 }
   0xc   : > { %s4638_s25 = scalar_select %p4080_p3, 1, 0 }
   0xd   : > { %p3576_p4 = pneg %p4080_p3  ;;  %p3834_p7 = scmp.ne.s32.totalorder %s427_s23, %s3833_s17 }
   0xe   : > { %p3841_p10 = scmp.lt.s32.totalorder %s427_s23, %s427_s23  ;;  %p3842_p11 = scmp.lt.s32.totalorder %s3833_s17, %s3833_s17 }
   0xf   : > { %p4090_p5 = pnand %p4634_p2, %p3576_p4 }
  0x10   : > { %p3843_p12 = por %p3842_p11, %p3841_p10 }
  0x11   : > { %p4098_p6 = pneg %p4090_p5 }
  0x13   : > { %p3836_p8 = pnand %p3834_p7, %p4098_p6 }
  0x15   : > { %p3837_p9 = pneg %p3836_p8 }
  0x17   : > { %p3844_p13 = pnand %p3843_p12, %p3837_p9 }
  0x19   : > { %3847 = shalt.err (!%p3844_p13)
}
  0x1a   : > { %s4632_s18 = smov 64   ;;  %s4633_s19 = smov 4  }
  0x1b   : > { %3582 = dma.hbm_to_vmem [thread:$0]  (!%p4090_p5), %s4617_s2, 3072, %s427_s23, [#allocation6], %s4632_s18, %s4632_s18, %s4633_s19  }
  0x1c   : > { %s3859_s26 = scalar_lea.vmem %s4086_s27, 3072  ;;  %p3867_p7 = scmp.lt.s32.totalorder %s4086_s27, %s4086_s27 }
  0x1d   : > { %p3860_p0 = scmp.ne.s32.totalorder %s4086_s27, %s3859_s26  ;;  %p3868_p8 = scmp.lt.s32.totalorder %s3859_s26, %s3859_s26 }
  0x1f   : > { %p3862_p1 = pnand %p3860_p0, %p4098_p6  ;;  %p3869_p9 = por %p3868_p8, %p3867_p7 }
  0x21   : > { %p3863_p4 = pneg %p3862_p1 }
  0x23   : > { %p3870_p10 = pnand %p3869_p9, %p3863_p4 }
  0x25   : > { %3873 = shalt.err (!%p3870_p10)
}
  0x26   : > { %3588 = dma.hbm_to_vmem [thread:$0]  (!%p4090_p5), %s4620_s5, 3072, %s4086_s27, [#allocation9], %s4632_s18, %s4632_s18, %s4633_s19  }
  0x27   : > { %s3885_s23 = scalar_lea.vmem %s4094_s30, 384  ;;  %p3893_p0 = scmp.lt.s32.totalorder %s4094_s30, %s4094_s30 }
  0x28   : > { %p3886_p11 = scmp.ne.s32.totalorder %s4094_s30, %s3885_s23  ;;  %p3894_p1 = scmp.lt.s32.totalorder %s3885_s23, %s3885_s23 }
  0x2a   : > { %p3888_p12 = pnand %p3886_p11, %p4098_p6  ;;  %p3895_p4 = por %p3894_p1, %p3893_p0 }
  0x2c   : > { %p3889_p13 = pneg %p3888_p12 }
  0x2e   : > { %p3896_p7 = pnand %p3895_p4, %p3889_p13 }
  0x30   : > { %3899 = shalt.err (!%p3896_p7)
}
  0x31   : > { %s3977_s20 = smov 128   ;;  %s3978_s22 = smov 8  }
  0x32   : > { %s4641_s1 = sld [smem:[#allocation15_spill]]  ;;  %s3979_s27 = smov [#allocation7]  }
  0x33   : > { %s442_s17 = sshll.u32 %s3979_s27, 4  ;;  %s3980_s18 = smov [#allocation10]   ;;  %s443_s17 = int_to_ptr.vmem [resolvable:$true] %s442_s17 }
  0x34   : > { %s474_s19 = sshll.u32 %s3980_s18, 4  ;;  %s3911_s23 = scalar_lea.vmem %s443_s17, 384  ;;  %s475_s19 = int_to_ptr.vmem [resolvable:$true] %s474_s19 }
  0x35   : > { %p3912_p8 = scmp.ne.s32.totalorder %s443_s17, %s3911_s23  ;;  %p3919_p11 = scmp.lt.s32.totalorder %s443_s17, %s443_s17 }
  0x36   : > { %p3920_p12 = scmp.lt.s32.totalorder %s3911_s23, %s3911_s23 }
  0x37   : > { %p3914_p9 = pnand %p3912_p8, %p4098_p6 }
  0x38   : > { %3579 = dma.hbm_to_vmem [thread:$0]  (!%p4090_p5), %s4641_s1, 384, %s4094_s30, [#allocation4], %s3977_s20, %s3977_s20, %s3978_s22  }
  0x39   : > { %p3915_p10 = pneg %p3914_p9  ;;  %p3921_p13 = por %p3920_p12, %p3919_p11 }
  0x3b   : > { %p3922_p0 = pnand %p3921_p13, %p3915_p10 }
  0x3d   : > { %3925 = shalt.err (!%p3922_p0)
}
  0x3e   : > { %3585 = dma.hbm_to_vmem [thread:$0]  (!%p4090_p5), %s4619_s4, 384, %s443_s17, [#allocation6], %s3977_s20, %s3977_s20, %s3978_s22  }
  0x3f   : > { %s3937_s18 = scalar_lea.vmem %s475_s19, 3072  ;;  %p3945_p2 = scmp.lt.s32.totalorder %s475_s19, %s475_s19 }
  0x40   : > { %p3938_p1 = scmp.ne.s32.totalorder %s475_s19, %s3937_s18  ;;  %p3946_p8 = scmp.lt.s32.totalorder %s3937_s18, %s3937_s18 }
  0x42   : > { %p3940_p4 = pnand %p3938_p1, %p4098_p6  ;;  %p3947_p9 = por %p3946_p8, %p3945_p2 }
  0x44   : > { %p3941_p7 = pneg %p3940_p4 }
  0x46   : > { %p3948_p3 = pnand %p3947_p9, %p3941_p7 }
  0x48   : > { %3951 = shalt.err (!%p3948_p3)
}
  0x49   : > { %s4642_s29 = smov 4   ;;  %s4643_s27 = smov 64  }
  0x4a   : > { %3591 = dma.hbm_to_vmem [thread:$0]  (!%p4090_p5), %s4623_s8, 3072, %s475_s19, [#allocation9], %s4643_s27, %s4643_s27, %s4642_s29  }
  0x4b   : > { %p4644_p10 = scmp.ne.s32.totalorder %s4638_s25, 0 }
  0x4c   : > { %p4645_p6 = scmp.eq.s32.totalorder (!%p4644_p10), %s4075_s24, 0 }
  0x4d   : > { %519 = sbr.rel (%p4644_p10) target bundleno = 2199 (0x897), region = 84 }
  0x52   : > { %3957 = dma.done.wait (%p4645_p6), [#allocation4], 384   ;;  %p4646_p11 = pmov %p4645_p6 }
  0x53   : > { %p4647_p2 = pmov %p4645_p6 }
  0x54   : > { %3959 = vsyncadd (%p4646_p11), [#allocation4], 4294966912 }
  0x55   : > { %3961 = dma.done.wait (%p4647_p2), [#allocation6], 3456   ;;  %p4648_p3 = pmov %p4647_p2 }
  0x56   : > { %p4649_p12 = pmov %p4647_p2 }
  0x57   : > { %3963 = vsyncadd (%p4648_p3), [#allocation6], 4294963840 }
  0x58   : > { %3965 = dma.done.wait (%p4649_p12), [#allocation9], 6144   ;;  %p4650_p5 = pmov %p4647_p2 }
  0x59   : > { %p585_p13 = scmp.lt.s32.totalorder %s4075_s24, 1  ;;  %v3981_v0 = vmov 0.0   ;;  %vm3982_vm0 = vmmov 0   ;;  %s4651_s0 = sld [smem:[#allocation14_spill]]  ;;  %v598_v3 = vld [vmem:[#allocation3] sm:$0xff]  ;;  %vm601_vm1 = vcmask 130048  }
  0x5a   : > { %3967 = vsyncadd (%p4650_p5), [#allocation9], 4294961152  ;;  %3450 = vmatprep.subr.mxu0 %v3981_v0  ;;  %3454 = vmatprep.mubr.msk.f32.mxu0 %vm3982_vm0, %v3981_v0  ;;  %v3622_v4 = vld [vmem:[#allocation5 + $0x78] sm:$0xff]   ;;  %v599_v5 = vld [vmem:[#allocation3 + $0x8] sm:$0xff]  ;;  %vm983_vm2 = vcmask 64512  }
  0x5b   : > { %s4653_s24 = smov (!%p585_p13, %s4075_s24), 1  ;;  %v3623_v6 = vld [vmem:[#allocation5 + $0x38] sm:$0xff]   ;;  %3276 = vmatprep.subr.bf16.mxu1 %v3622_v4  ;;  %v3624_v7 = vld [vmem:[#allocation5 + $0x70] sm:$0xff]   ;;  %v3627_v11 = vld [vmem:[#allocation5 + $0x68] sm:$0xff]  }
  0x5c   : > { %s3269_s1 = sshll.u32 %s4653_s24, 4  ;;  %3277 = vmatpush3.bf16.msra.mxu1 %v3623_v6  ;;  %v3625_v8 = vld [vmem:[#allocation5 + $0xb8] sm:$0xff]   ;;  %v3626_v9 = vld [vmem:[#allocation5 + $0x30] sm:$0xff]   ;;  %v3629_v13 = vld [vmem:[#allocation5 + $0x28] sm:$0xff]  }
  0x5d   : > { %3278 = vmatprep.subr.bf16.mxu1 %v3624_v7  ;;  %v600_v10 = vld [vmem:[#allocation3 + $0x10] sm:$0xff]  ;;  %v3628_v12 = vld [vmem:[#allocation5 + $0xb0] sm:$0xff]   ;;  %v3630_v14 = vld [vmem:[#allocation5 + $0x60] sm:$0xff]   ;;  %s594_s20 = scalar_lea.vmem %s4631_s16, %s3269_s1 }
  0x5e   : > { %v3631_v15 = vld [vmem:[#allocation5 + $0xa8] sm:$0xff]   ;;  %v3632_v16 = vld [vmem:[#allocation5 + $0x20] sm:$0xff]   ;;  %v3633_v17 = vld [vmem:[#allocation5 + $0x58] sm:$0xff]  }
  0x5f   : > { %s589_s19 = scalar_lea.vmem %s4651_s0, %s3269_s1  ;;  %v3634_v18 = vld [vmem:[#allocation5 + $0xa0] sm:$0xff]   ;;  %v3635_v19 = vld [vmem:[#allocation5 + $0x18] sm:$0xff]   ;;  %v3636_v20 = vld [vmem:[#allocation5 + $0x50] sm:$0xff]  }
  0x60   : > { %v597_v1 = vld [vmem:[%s589_s19 + $0x8] sm:$0xff]  ;;  %v596_v2 = vld [vmem:[%s589_s19] sm:$0xff]  ;;  %3279 = vmatpush3.bf16.msra.mxu1 %v3626_v9  ;;  %v3637_v21 = vld [vmem:[#allocation5 + $0x98] sm:$0xff]  }
  0x61   : > { %3451 = vmatpush3.msra.mxu0 %v597_v1  ;;  %3280 = vmatprep.subr.bf16.mxu1 %v3627_v11  ;;  %v3638_v22 = vld [vmem:[#allocation5 + $0x10] sm:$0xff]   ;;  %v3639_v23 = vld [vmem:[#allocation5 + $0x48] sm:$0xff]   ;;  %v3642_v26 = vld [vmem:[#allocation5 + $0x40] sm:$0xff]  }
  0x62   : > { %3452 = vmatprep.subr.mxu0 %v3981_v0  ;;  %v3640_v24 = vld [vmem:[#allocation5 + $0x90] sm:$0xff]   ;;  %v3641_v25 = vld [vmem:[#allocation5 + $0x8] sm:$0xff]   ;;  %v3644_v28 = vld [vmem:[#allocation5] sm:$0xff]  }
  0x63   : > { %3453 = vmatpush3.msra.mxu0 %v596_v2  ;;  %v3643_v27 = vld [vmem:[#allocation5 + $0x88] sm:$0xff]   ;;  %v3645_v29 = vld [vmem:[#allocation5 + $0x80] sm:$0xff]   ;;  %v3649_v39 = vld [vmem:[#allocation8 + $0xb8] sm:$0xff]  }
  0x64   : > { %3455 = vmatmul.mubr.msk.f32.vlgmr.msra.gmra.mxu0 %vm601_vm1, %v598_v3  ;;  %3463 = vmatprep.subr.bf16.mxu0 %v3981_v0  ;;  %v3652_v40 = vld [vmem:[#allocation8 + $0xb0] sm:$0xff]   ;;  %v3655_v41 = vld [vmem:[#allocation8 + $0xa8] sm:$0xff]   ;;  %v3658_v42 = vld [vmem:[#allocation8 + $0xa0] sm:$0xff]  }
  0x65   : > { %3457 = vmatprep.mubr.msk.f32.mxu0 %vm3982_vm0, %v3981_v0  ;;  %3464 = vmatpush3.bf16.msra.mxu0 %v3625_v8  ;;  %v3661_v43 = vld [vmem:[#allocation8 + $0x98] sm:$0xff]   ;;  %v3077_v46 = vld [vmem:[%s4618_s3] ss:$0 sm:$0xff]  ;;  %v980_v58 = vld [vmem:[#allocation7] sm:$0xff] }
  0x66   : > { %3465 = vmatprep.subr.bf16.mxu0 %v3981_v0  ;;  %3281 = vmatpush3.bf16.msra.mxu1 %v3629_v13  ;;  %v3646_v55 = vld [vmem:[#allocation8 + $0x78] sm:$0xff]   ;;  %v3648_v60 = vld [vmem:[#allocation8 + $0x70] sm:$0xff]   ;;  %v3651_v63 = vld [vmem:[#allocation8 + $0x68] sm:$0xff]  }
  0x67   : > { %3282 = vmatprep.subr.bf16.mxu1 %v3630_v14  ;;  %v3647_v59 = vld [vmem:[#allocation8 + $0x38] sm:$0xff]   ;;  %v981_v61 = vld [vmem:[#allocation7 + $0x8] sm:$0xff]  ;;  %v3653_v2 = vld [vmem:[#allocation8 + $0x28] sm:$0xff]  }
  0x68   : > { %3458 = vmatmul.mubr.msk.f32.gmra.mxu0 %vm601_vm1, %v599_v5  ;;  %v3650_v62 = vld [vmem:[#allocation8 + $0x30] sm:$0xff]   ;;  %v982_v1 = vld [vmem:[#allocation7 + $0x10] sm:$0xff]  ;;  %v3654_v3 = vld [vmem:[#allocation8 + $0x60] sm:$0xff]  }
  0x69   : > { %3460 = vmatprep.mubr.msk.f32.mxu0 %vm3982_vm0, %v3981_v0  ;;  %3466 = vmatpush3.bf16.msra.mxu0 %v3628_v12  ;;  %v3656_v4 = vld [vmem:[#allocation8 + $0x20] sm:$0xff]   ;;  %v3657_v5 = vld [vmem:[#allocation8 + $0x58] sm:$0xff]   ;;  %v3660_v7 = vld [vmem:[#allocation8 + $0x50] sm:$0xff]  }
  0x6a   : > { %3467 = vmatprep.subr.bf16.mxu0 %v3981_v0  ;;  %3283 = vmatpush3.bf16.msra.mxu1 %v3632_v16  ;;  %v3659_v6 = vld [vmem:[#allocation8 + $0x18] sm:$0xff]   ;;  %v3662_v8 = vld [vmem:[#allocation8 + $0x10] sm:$0xff]   ;;  %v3663_v9 = vld [vmem:[#allocation8 + $0x48] sm:$0xff]  }
  0x6b   : > { %3284 = vmatprep.subr.bf16.mxu1 %v3633_v17  ;;  %v3665_v11 = vld [vmem:[#allocation8 + $0x8] sm:$0xff]   ;;  %v3666_v12 = vld [vmem:[#allocation8 + $0x40] sm:$0xff]  }
  0x6c   : > { %3461 = vmatmul.mubr.msk.f32.gmra.mxu0 %vm601_vm1, %v600_v10  ;;  %v3664_v10 = vld [vmem:[#allocation8 + $0x90] sm:$0xff]   ;;  %v3667_v13 = vld [vmem:[#allocation8 + $0x88] sm:$0xff]   ;;  %v3668_v14 = vld [vmem:[#allocation8] sm:$0xff]  }
  0x6d   : > { %3479 = vmatprep.mubr.msk.bf16.mxu0 %vm3982_vm0, %v3981_v0  ;;  %3468 = vmatpush3.bf16.msra.mxu0 %v3631_v15  ;;  %v3669_v15 = vld [vmem:[#allocation8 + $0x80] sm:$0xff]  }
  0x6e   : > { %3469 = vmatprep.subr.bf16.mxu0 %v3981_v0  ;;  %3285 = vmatpush3.bf16.msra.mxu1 %v3635_v19 }
  0x6f   : > { %3286 = vmatprep.subr.bf16.mxu1 %v3636_v20 }
  0x71   : > { %3470 = vmatpush3.bf16.msra.mxu0 %v3634_v18 }
  0x72   : > { %3471 = vmatprep.subr.bf16.mxu0 %v3981_v0  ;;  %3287 = vmatpush3.bf16.msra.mxu1 %v3638_v22 }
  0x73   : > { %3288 = vmatprep.subr.bf16.mxu1 %v3639_v23 }
  0x75   : > { %3472 = vmatpush3.bf16.msra.mxu0 %v3637_v21 }
  0x76   : > { %3473 = vmatprep.subr.bf16.mxu0 %v3981_v0  ;;  %3289 = vmatpush3.bf16.msra.mxu1 %v3641_v25  ;;  %v3670_v25 = vld [vmem:[#allocation10 + $0x78] sm:$0xff]  }
  0x77   : > { %3290 = vmatprep.subr.bf16.mxu1 %v3642_v26  ;;  %v3671_v26 = vld [vmem:[#allocation10 + $0x38] sm:$0xff]  }
  0x79   : > { %3474 = vmatpush3.bf16.msra.mxu0 %v3640_v24 }
  0x7a   : > { %3475 = vmatprep.subr.bf16.mxu0 %v3981_v0  ;;  %3291 = vmatpush3.bf16.msra.mxu1 %v3644_v28  ;;  %v3674_v28 = vld [vmem:[#allocation10 + $0x30] sm:$0xff]  }
  0x7b   : > { %3494 = vmatprep.subr.bf16.mxu1 %v3981_v0 }
  0x7d   : > { %3476 = vmatpush3.bf16.msra.mxu0 %v3643_v27  ;;  %v3672_v27 = vld [vmem:[#allocation10 + $0x70] sm:$0xff]  }
  0x7e   : > { %3477 = vmatprep.subr.bf16.mxu0 %v3981_v0 }
  0x81   : > { %3478 = vmatpush3.bf16.msra.mxu0 %v3645_v29  ;;  %v3675_v29 = vld [vmem:[#allocation10 + $0x68] sm:$0xff]  }
  0x82   : > { %3483 = vmatprep.subr.mxu0 %v3981_v0 }
 0x124   : > { %v677_v30 = vpop.f32.mrf.mxu0 }
 0x125   : > { %v697_v34 = vpack.c.bf16 %v677_v30, %v677_v30  ;;  %v3677_v30 = vld [vmem:[#allocation10 + $0x28] sm:$0xff]  }
 0x126   : > { %v3456_v31 = vpop.f32.mrf.mxu0 }
 0x127   : > { %v3678_v31 = vld [vmem:[#allocation10 + $0x60] sm:$0xff]  }
 0x128   : > { %v682_v32 = vpop.f32.mrf.mxu0 }
 0x129   : > { %v698_v33 = vpack.c.bf16 %v682_v32, %v682_v32  ;;  %v3680_v32 = vld [vmem:[#allocation10 + $0x20] sm:$0xff]  }
 0x12a   : > { %v3459_v35 = vpop.f32.mrf.mxu0 }
 0x12b   : > { %931 = vmatprep.mubr.bf16.mxu1 %v698_v33  ;;  %v3681_v33 = vld [vmem:[#allocation10 + $0x58] sm:$0xff]   ;;  %v3684_v35 = vld [vmem:[#allocation10 + $0x50] sm:$0xff]  }
 0x12c   : > { %v687_v36 = vpop.f32.mrf.mxu0  ;;  %932 = vmatmul.mubr.bf16.vlgmr.msra.gmra.mxu1 %v697_v34  ;;  %v3683_v34 = vld [vmem:[#allocation10 + $0x18] sm:$0xff]  }
 0x12d   : > { %v699_v37 = vpack.c.bf16 %v687_v36, %v687_v36  ;;  %3510 = vmatprep.mubr.msk.bf16.mxu1 %vm3982_vm0, %v3981_v0  ;;  %3495 = vmatpush3.bf16.msra.mxu1 %v3649_v39  ;;  %v3686_v36 = vld [vmem:[#allocation10 + $0x10] sm:$0xff]  }
 0x12e   : > { %v3462_v38 = vpop.f32.mrf.mxu0  ;;  %3496 = vmatprep.subr.bf16.mxu1 %v3981_v0  ;;  %v3105_v39 = vld [vmem:[%s4621_s6] ss:$0 sm:$0xff] }
 0x12f   : > { %3480 = vmatmul.mubr.bf16.vlgmr.msra.gmra.mxu0 %v699_v37 }
 0x130   : > { %3485 = vmatprep.mubr.msk.f32.mxu0 %vm3982_vm0, %v3981_v0 }
 0x131   : > { %3497 = vmatpush3.bf16.msra.mxu1 %v3652_v40 }
 0x132   : > { %3498 = vmatprep.subr.bf16.mxu1 %v3981_v0 }
 0x135   : > { %3499 = vmatpush3.bf16.msra.mxu1 %v3655_v41 }
 0x136   : > { %3500 = vmatprep.subr.bf16.mxu1 %v3981_v0 }
 0x139   : > { %3501 = vmatpush3.bf16.msra.mxu1 %v3658_v42 }
 0x13a   : > { %3502 = vmatprep.subr.bf16.mxu1 %v3981_v0 }
 0x13d   : > { %3503 = vmatpush3.bf16.msra.mxu1 %v3661_v43 }
 0x13e   : > { %3504 = vmatprep.subr.bf16.mxu1 %v3981_v0 }
 0x141   : > { %3505 = vmatpush3.bf16.msra.mxu1 %v3664_v10 }
 0x142   : > { %3506 = vmatprep.subr.bf16.mxu1 %v3981_v0 }
 0x145   : > { %3507 = vmatpush3.bf16.msra.mxu1 %v3667_v13  ;;  %v3696_v13 = vld [vmem:[%s4626_s11 + $0x74] ss:$8 sps:$4 sm:$0xff]  }
 0x146   : > { %3508 = vmatprep.subr.bf16.mxu1 %v3981_v0 }
 0x149   : > { %3509 = vmatpush3.bf16.msra.mxu1 %v3669_v15  ;;  %v3697_v15 = vld [vmem:[%s4626_s11 + $0x60] ss:$8 sps:$4 sm:$0xff]  }
 0x14a   : > { %3346 = vmatprep.subr.bf16.mxu1 %v3670_v25  ;;  %v3712_v25 = vld [vmem:[%s4626_s11 + $0x10] ss:$8 sps:$4 sm:$0xff]  }
 0x1ec   : > { %v3292_v44 = vpop.f32.mrf.mxu1 }
 0x1ee   : > { %v3293_v45 = vpop.f32.mrf.mxu1 }
 0x1ef   : > { %v3294_v47 = vadd.f32 %v3293_v45, %v3292_v44  ;;  %v973_v48 = vpop.f32.mrf.mxu0 }
 0x1f0   : > { %v3295_v49 = vpop.f32.mrf.mxu1 }
 0x1f1   : > { %v934_v50 = vadd.f32 %v3294_v47, %v3077_v46  ;;  %v3481_v51 = vpop.f32.mrf.mxu0 }
 0x1f2   : > { %v3296_v52 = vpop.f32.mrf.mxu1  ;;  %v3673_v51 = vld [vmem:[#allocation10 + $0xb8] sm:$0xff]  }
 0x1f3   : > { %v974_v53 = vadd.f32 %v973_v48, %v934_v50  ;;  %v976_v54 = vpop.f32.mrf.mxu0  ;;  %v1362_v50 = vld [vmem:[%s4622_s7] sm:$0xff]  ;;  %v1363_v52 = vld [vmem:[%s4622_s7 + $0x8] sm:$0xff] }
 0x1f4   : > { %v1364_v54 = vld [vmem:[%s4622_s7 + $0x10] sm:$0xff] }
 0x1f5   : > { %v979_v56 = vmax.f32 %v974_v53, 0.0  ;;  %v3482_v57 = vpop.f32.mrf.mxu0  ;;  %v3676_v53 = vld [vmem:[#allocation10 + $0xb0] sm:$0xff]  }
 0x1f6   : > { %v3685_v57 = vld [vmem:[#allocation10 + $0x98] sm:$0xff]  }
 0x1f7   : > { %3484 = vmatpush3.msra.mxu0 %v979_v56  ;;  %v3682_v56 = vld [vmem:[#allocation10 + $0xa0] sm:$0xff]  }
 0x1f8   : > { %3486 = vmatmul.mubr.msk.f32.vlgmr.msra.gmra.mxu0 %vm983_vm2, %v980_v58  ;;  %3311 = vmatprep.subr.bf16.mxu0 %v3646_v55  ;;  %v3679_v55 = vld [vmem:[#allocation10 + $0xa8] sm:$0xff]  }
 0x1f9   : > { %3488 = vmatprep.mubr.msk.f32.mxu0 %vm3982_vm0, %v3981_v0  ;;  %3312 = vmatpush3.bf16.msra.mxu0 %v3647_v59  ;;  %v3687_v58 = vld [vmem:[#allocation10 + $0x48] sm:$0xff]   ;;  %v3688_v59 = vld [vmem:[#allocation10 + $0x90] sm:$0xff]  }
 0x1fa   : > { %3313 = vmatprep.subr.bf16.mxu0 %v3648_v60  ;;  %v3689_v60 = vld [vmem:[#allocation10 + $0x8] sm:$0xff]  }
 0x1fc   : > { %3489 = vmatmul.mubr.msk.f32.gmra.mxu0 %vm983_vm2, %v981_v61  ;;  %v3690_v61 = vld [vmem:[#allocation10 + $0x40] sm:$0xff]  }
 0x1fd   : > { %3491 = vmatprep.mubr.msk.f32.mxu0 %vm3982_vm0, %v3981_v0  ;;  %3314 = vmatpush3.bf16.msra.mxu0 %v3650_v62  ;;  %v3691_v62 = vld [vmem:[#allocation10 + $0x88] sm:$0xff]  }
 0x1fe   : > { %3315 = vmatprep.subr.bf16.mxu0 %v3651_v63  ;;  %v3692_v63 = vld [vmem:[#allocation10] sm:$0xff]  }
 0x200   : > { %3492 = vmatmul.mubr.msk.f32.gmra.mxu0 %vm983_vm2, %v982_v1  ;;  %v3693_v1 = vld [vmem:[#allocation10 + $0x80] sm:$0xff]  }
 0x201   : > { %3316 = vmatpush3.bf16.msra.mxu0 %v3653_v2 }
 0x202   : > { %3317 = vmatprep.subr.bf16.mxu0 %v3654_v3 }
 0x205   : > { %3318 = vmatpush3.bf16.msra.mxu0 %v3656_v4 }
 0x206   : > { %3319 = vmatprep.subr.bf16.mxu0 %v3657_v5 }
 0x209   : > { %3320 = vmatpush3.bf16.msra.mxu0 %v3659_v6 }
 0x20a   : > { %3321 = vmatprep.subr.bf16.mxu0 %v3660_v7 }
 0x20d   : > { %3322 = vmatpush3.bf16.msra.mxu0 %v3662_v8 }
 0x20e   : > { %3323 = vmatprep.subr.bf16.mxu0 %v3663_v9 }
 0x211   : > { %3324 = vmatpush3.bf16.msra.mxu0 %v3665_v11  ;;  %v1743_v11 = vld [vmem:[%s4625_s10] sm:$0xff] }
 0x212   : > { %3325 = vmatprep.subr.bf16.mxu0 %v3666_v12  ;;  %v3694_v12 = vld [vmem:[%s4626_s11 + $0x70] ss:$8 sps:$4 sm:$0xff]  }
 0x215   : > { %3326 = vmatpush3.bf16.msra.mxu0 %v3668_v14  ;;  %v3699_v14 = vld [vmem:[%s4626_s11 + $0x64] ss:$8 sps:$4 sm:$0xff]  }
 0x216   : > { %3514 = vmatprep.subr.mxu0 %v3981_v0 }
 0x2b8   : > { %v1059_v16 = vpop.f32.mrf.mxu0 }
 0x2b9   : > { %v1079_v20 = vpack.c.bf16 %v1059_v16, %v1059_v16  ;;  %v3702_v16 = vld [vmem:[%s4626_s11 + $0x54] ss:$8 sps:$4 sm:$0xff]  }
 0x2ba   : > { %v3487_v17 = vpop.f32.mrf.mxu0 }
 0x2bb   : > { %v3700_v17 = vld [vmem:[%s4626_s11 + $0x50] ss:$8 sps:$4 sm:$0xff]  }
 0x2bc   : > { %v1064_v18 = vpop.f32.mrf.mxu0 }
 0x2bd   : > { %v1080_v19 = vpack.c.bf16 %v1064_v18, %v1064_v18  ;;  %v3705_v18 = vld [vmem:[%s4626_s11 + $0x44] ss:$8 sps:$4 sm:$0xff]  }
 0x2be   : > { %v3490_v21 = vpop.f32.mrf.mxu0 }
 0x2bf   : > { %1313 = vmatprep.mubr.bf16.mxu0 %v1080_v19  ;;  %v3703_v19 = vld [vmem:[%s4626_s11 + $0x40] ss:$8 sps:$4 sm:$0xff]   ;;  %v3706_v21 = vld [vmem:[%s4626_s11 + $0x30] ss:$8 sps:$4 sm:$0xff]  }
 0x2c0   : > { %v1069_v22 = vpop.f32.mrf.mxu0  ;;  %1314 = vmatmul.mubr.bf16.vlgmr.msra.gmra.mxu0 %v1079_v20  ;;  %v3708_v20 = vld [vmem:[%s4626_s11 + $0x34] ss:$8 sps:$4 sm:$0xff]  }
 0x2c1   : > { %v1081_v23 = vpack.c.bf16 %v1069_v22, %v1069_v22  ;;  %3516 = vmatprep.mubr.msk.f32.mxu0 %vm3982_vm0, %v3981_v0  ;;  %v3711_v22 = vld [vmem:[%s4626_s11 + $0x24] ss:$8 sps:$4 sm:$0xff]  }
 0x2c2   : > { %v3493_v24 = vpop.f32.mrf.mxu0 }
 0x2c3   : > { %3511 = vmatmul.mubr.bf16.vlgmr.msra.gmra.mxu1 %v1081_v23  ;;  %v3709_v23 = vld [vmem:[%s4626_s11 + $0x20] ss:$8 sps:$4 sm:$0xff]   ;;  %v3714_v24 = vld [vmem:[%s4626_s11 + $0x14] ss:$8 sps:$4 sm:$0xff]  }
 0x2c4   : > { %3347 = vmatpush3.bf16.msra.mxu1 %v3671_v26  ;;  %v3717_v26 = vld [vmem:[%s4626_s11 + $0x4] ss:$8 sps:$4 sm:$0xff]  }
 0x2c5   : > { %3348 = vmatprep.subr.bf16.mxu1 %v3672_v27  ;;  %v3715_v27 = vld [vmem:[%s4626_s11] ss:$8 sps:$4 sm:$0xff]  }
 0x2c8   : > { %3349 = vmatpush3.bf16.msra.mxu1 %v3674_v28  ;;  %v3720_v28 = vld [vmem:[%s4626_s11 + $0xf4] ss:$8 sps:$4 sm:$0xff]  }
 0x2c9   : > { %3350 = vmatprep.subr.bf16.mxu1 %v3675_v29  ;;  %v3718_v29 = vld [vmem:[%s4626_s11 + $0xf0] ss:$8 sps:$4 sm:$0xff]  }
 0x2cc   : > { %3351 = vmatpush3.bf16.msra.mxu1 %v3677_v30  ;;  %v3726_v30 = vld [vmem:[%s4626_s11 + $0xe4] ss:$8 sps:$4 sm:$0xff]  }
 0x2cd   : > { %3352 = vmatprep.subr.bf16.mxu1 %v3678_v31  ;;  %v3724_v31 = vld [vmem:[%s4626_s11 + $0xe0] ss:$8 sps:$4 sm:$0xff]  }
 0x2d0   : > { %3353 = vmatpush3.bf16.msra.mxu1 %v3680_v32  ;;  %v3732_v32 = vld [vmem:[%s4626_s11 + $0xd4] ss:$8 sps:$4 sm:$0xff]  }
 0x2d1   : > { %3354 = vmatprep.subr.bf16.mxu1 %v3681_v33  ;;  %v3730_v33 = vld [vmem:[%s4626_s11 + $0xd0] ss:$8 sps:$4 sm:$0xff]  }
 0x2d4   : > { %3355 = vmatpush3.bf16.msra.mxu1 %v3683_v34  ;;  %v3738_v34 = vld [vmem:[%s4626_s11 + $0xc4] ss:$8 sps:$4 sm:$0xff]  }
 0x2d5   : > { %3356 = vmatprep.subr.bf16.mxu1 %v3684_v35  ;;  %v3736_v35 = vld [vmem:[%s4626_s11 + $0xc0] ss:$8 sps:$4 sm:$0xff]  }
 0x2d8   : > { %3357 = vmatpush3.bf16.msra.mxu1 %v3686_v36  ;;  %v3744_v36 = vld [vmem:[%s4626_s11 + $0xb4] ss:$8 sps:$4 sm:$0xff]  }
 0x2d9   : > { %3358 = vmatprep.subr.bf16.mxu1 %v3687_v58  ;;  %v1746_v58 = vld [vmem:[%s4625_s10 + $0x18] sm:$0xff] }
 0x2dc   : > { %3359 = vmatpush3.bf16.msra.mxu1 %v3689_v60  ;;  %v1747_v60 = vld [vmem:[%s4625_s10 + $0x20] sm:$0xff] }
 0x2dd   : > { %3360 = vmatprep.subr.bf16.mxu1 %v3690_v61  ;;  %v3735_v61 = vld [vmem:[%s4626_s11 + $0x154] ss:$8 sps:$4 sm:$0xff]  }
 0x2e0   : > { %3361 = vmatpush3.bf16.msra.mxu1 %v3692_v63  ;;  %v3733_v63 = vld [vmem:[%s4626_s11 + $0x150] ss:$8 sps:$4 sm:$0xff]  }
 0x380   : > { %v3327_v37 = vpop.f32.mrf.mxu0 }
 0x382   : > { %v3328_v38 = vpop.f32.mrf.mxu0 }
 0x383   : > { %v3329_v40 = vadd.f32 %v3328_v38, %v3327_v37  ;;  %v1355_v41 = vpop.f32.mrf.mxu1  ;;  %v3742_v37 = vld [vmem:[%s4626_s11 + $0xb0] ss:$8 sps:$4 sm:$0xff]   ;;  %v3750_v38 = vld [vmem:[%s4626_s11 + $0xa4] ss:$8 sps:$4 sm:$0xff]  }
 0x384   : > { %v3330_v42 = vpop.f32.mrf.mxu0 }
 0x385   : > { %v1316_v43 = vadd.f32 %v3329_v40, %v3105_v39  ;;  %v3512_v44 = vpop.f32.mrf.mxu1  ;;  %v3748_v39 = vld [vmem:[%s4626_s11 + $0xa0] ss:$8 sps:$4 sm:$0xff]  }
 0x386   : > { %v3331_v45 = vpop.f32.mrf.mxu0  ;;  %v3133_v42 = vld [vmem:[%s4624_s9] ss:$0 sm:$0xff] }
 0x387   : > { %v1356_v46 = vadd.f32 %v1355_v41, %v1316_v43  ;;  %v1358_v47 = vpop.f32.mrf.mxu1 }
 0x389   : > { %v1361_v48 = vmax.f32 %v1356_v46, 0.0  ;;  %v3513_v49 = vpop.f32.mrf.mxu1 }
 0x38b   : > { %3515 = vmatpush3.msra.mxu0 %v1361_v48 }
 0x38c   : > { %3517 = vmatmul.mubr.msk.f32.vlgmr.msra.gmra.mxu0 %vm983_vm2, %v1362_v50  ;;  %3525 = vmatprep.subr.bf16.mxu0 %v3981_v0 }
 0x38d   : > { %3519 = vmatprep.mubr.msk.f32.mxu0 %vm3982_vm0, %v3981_v0  ;;  %3526 = vmatpush3.bf16.msra.mxu0 %v3673_v51 }
 0x38e   : > { %3527 = vmatprep.subr.bf16.mxu0 %v3981_v0 }
 0x390   : > { %3520 = vmatmul.mubr.msk.f32.gmra.mxu0 %vm983_vm2, %v1363_v52 }
 0x391   : > { %3522 = vmatprep.mubr.msk.f32.mxu0 %vm3982_vm0, %v3981_v0  ;;  %3528 = vmatpush3.bf16.msra.mxu0 %v3676_v53  ;;  %v3723_v53 = vld [vmem:[%s4626_s11 + $0x174] ss:$8 sps:$4 sm:$0xff]  }
 0x392   : > { %3529 = vmatprep.subr.bf16.mxu0 %v3981_v0 }
 0x394   : > { %3523 = vmatmul.mubr.msk.f32.gmra.mxu0 %vm983_vm2, %v1364_v54  ;;  %v1744_v54 = vld [vmem:[%s4625_s10 + $0x8] sm:$0xff] }
 0x395   : > { %3530 = vmatpush3.bf16.msra.mxu0 %v3679_v55  ;;  %3541 = vmatprep.mubr.msk.bf16.mxu0 %vm3982_vm0, %v3981_v0  ;;  %v3721_v55 = vld [vmem:[%s4626_s11 + $0x170] ss:$8 sps:$4 sm:$0xff]  }
 0x396   : > { %3531 = vmatprep.subr.bf16.mxu0 %v3981_v0 }
 0x399   : > { %3532 = vmatpush3.bf16.msra.mxu0 %v3682_v56  ;;  %v1745_v56 = vld [vmem:[%s4625_s10 + $0x10] sm:$0xff] }
 0x39a   : > { %3533 = vmatprep.subr.bf16.mxu0 %v3981_v0 }
 0x39d   : > { %3534 = vmatpush3.bf16.msra.mxu0 %v3685_v57  ;;  %v3729_v57 = vld [vmem:[%s4626_s11 + $0x164] ss:$8 sps:$4 sm:$0xff]  }
 0x39e   : > { %3535 = vmatprep.subr.bf16.mxu0 %v3981_v0 }
 0x3a1   : > { %3536 = vmatpush3.bf16.msra.mxu0 %v3688_v59  ;;  %v3727_v59 = vld [vmem:[%s4626_s11 + $0x160] ss:$8 sps:$4 sm:$0xff]  }
 0x3a2   : > { %3537 = vmatprep.subr.bf16.mxu0 %v3981_v0 }
 0x3a5   : > { %3538 = vmatpush3.bf16.msra.mxu0 %v3691_v62  ;;  %v1748_v62 = vld [vmem:[%s4625_s10 + $0x28] sm:$0xff] }
 0x3a6   : > { %3539 = vmatprep.subr.bf16.mxu0 %v3981_v0 }
 0x3a9   : > { %3540 = vmatpush3.bf16.msra.mxu0 %v3693_v1  ;;  %v3741_v1 = vld [vmem:[%s4626_s11 + $0x144] ss:$8 sps:$4 sm:$0xff]  }
 0x3aa   : > { %2177 = vmatprep.subr.bf16.mxu0 %v3696_v13  ;;  %v3765_v13 = vld [vmem:[%s4626_s11 + $0x104] ss:$8 sps:$4 sm:$0xff]  }
 0x44c   : > { %v1440_v2 = vpop.f32.mrf.mxu0 }
 0x44d   : > { %v1460_v6 = vpack.c.bf16 %v1440_v2, %v1440_v2  ;;  %v3739_v2 = vld [vmem:[%s4626_s11 + $0x140] ss:$8 sps:$4 sm:$0xff]  }
 0x44e   : > { %v3518_v3 = vpop.f32.mrf.mxu0 }
 0x44f   : > { %v3747_v3 = vld [vmem:[%s4626_s11 + $0x134] ss:$8 sps:$4 sm:$0xff]  }
 0x450   : > { %v1445_v4 = vpop.f32.mrf.mxu0 }
 0x451   : > { %v1461_v5 = vpack.c.bf16 %v1445_v4, %v1445_v4  ;;  %v3745_v4 = vld [vmem:[%s4626_s11 + $0x130] ss:$8 sps:$4 sm:$0xff]  }
 0x452   : > { %v3521_v7 = vpop.f32.mrf.mxu0 }
 0x453   : > { %1694 = vmatprep.mubr.bf16.mxu1 %v1461_v5  ;;  %v3753_v5 = vld [vmem:[%s4626_s11 + $0x124] ss:$8 sps:$4 sm:$0xff]   ;;  %v3756_v7 = vld [vmem:[%s4626_s11 + $0x94] ss:$8 sps:$4 sm:$0xff]  }
 0x454   : > { %v1450_v8 = vpop.f32.mrf.mxu0  ;;  %1695 = vmatmul.mubr.bf16.vlgmr.msra.gmra.mxu1 %v1460_v6  ;;  %v3751_v6 = vld [vmem:[%s4626_s11 + $0x120] ss:$8 sps:$4 sm:$0xff]  }
 0x455   : > { %v1462_v9 = vpack.c.bf16 %v1450_v8, %v1450_v8  ;;  %3547 = vmatprep.mubr.msk.f32.mxu1 %vm983_vm2, %v1743_v11  ;;  %v3754_v8 = vld [vmem:[%s4626_s11 + $0x90] ss:$8 sps:$4 sm:$0xff]   ;;  %v3762_v11 = vld [vmem:[%s4626_s11 + $0x84] ss:$8 sps:$4 sm:$0xff]  }
 0x456   : > { %v3524_v10 = vpop.f32.mrf.mxu0 }
 0x457   : > { %3542 = vmatmul.mubr.bf16.vlgmr.msra.gmra.mxu0 %v1462_v9  ;;  %v3759_v9 = vld [vmem:[%s4626_s11 + $0x114] ss:$8 sps:$4 sm:$0xff]   ;;  %v3757_v10 = vld [vmem:[%s4626_s11 + $0x110] ss:$8 sps:$4 sm:$0xff]  }
 0x458   : > { %2178 = vmatpush1.bf16.msra.mxu0 %v3694_v12  ;;  %v3760_v12 = vld [vmem:[%s4626_s11 + $0x80] ss:$8 sps:$4 sm:$0xff]  }
 0x459   : > { %2179 = vmatprep.subr.bf16.mxu0 %v3699_v14  ;;  %v3763_v14 = vld [vmem:[%s4626_s11 + $0x100] ss:$8 sps:$4 sm:$0xff]  }
 0x45c   : > { %2180 = vmatpush1.bf16.msra.mxu0 %v3697_v15  ;;  %v3983_v15 = vmov 0  }
 0x45d   : > { %2181 = vmatprep.subr.bf16.mxu0 %v3702_v16 }
 0x460   : > { %2182 = vmatpush1.bf16.msra.mxu0 %v3700_v17 }
 0x461   : > { %2183 = vmatprep.subr.bf16.mxu0 %v3705_v18 }
 0x464   : > { %2184 = vmatpush1.bf16.msra.mxu0 %v3703_v19 }
 0x465   : > { %2185 = vmatprep.subr.bf16.mxu0 %v3708_v20 }
 0x468   : > { %2186 = vmatpush1.bf16.msra.mxu0 %v3706_v21 }
 0x469   : > { %2187 = vmatprep.subr.bf16.mxu0 %v3711_v22 }
 0x46c   : > { %2188 = vmatpush1.bf16.msra.mxu0 %v3709_v23 }
 0x46d   : > { %2189 = vmatprep.subr.bf16.mxu0 %v3714_v24 }
 0x470   : > { %2190 = vmatpush1.bf16.msra.mxu0 %v3712_v25  ;;  %v3772_v25 = vld [vmem:[%s4629_s14 + $0xf8] sm:$0xff]  }
 0x471   : > { %2191 = vmatprep.subr.bf16.mxu0 %v3717_v26  ;;  %v3773_v26 = vld [vmem:[%s4629_s14 + $0xb8] sm:$0xff]  }
 0x474   : > { %2192 = vmatpush1.bf16.msra.mxu0 %v3715_v27  ;;  %v3776_v27 = vld [vmem:[%s4629_s14 + $0xf0] sm:$0xff]  }
 0x475   : > { %2193 = vmatprep.subr.bf16.mxu0 %v3720_v28  ;;  %v3777_v28 = vld [vmem:[%s4629_s14 + $0xb0] sm:$0xff]  }
 0x478   : > { %2194 = vmatpush2.bf16.msra.mxu0 %v3718_v29  ;;  %v3780_v29 = vld [vmem:[%s4629_s14 + $0xe8] sm:$0xff]  }
 0x479   : > { %2195 = vmatprep.subr.bf16.mxu0 %v3726_v30  ;;  %v3781_v30 = vld [vmem:[%s4629_s14 + $0xa8] sm:$0xff]  }
 0x47c   : > { %2196 = vmatpush2.bf16.msra.mxu0 %v3724_v31  ;;  %v3784_v31 = vld [vmem:[%s4629_s14 + $0xe0] sm:$0xff]  }
 0x47d   : > { %2197 = vmatprep.subr.bf16.mxu0 %v3732_v32  ;;  %v3785_v32 = vld [vmem:[%s4629_s14 + $0xa0] sm:$0xff]  }
 0x480   : > { %2198 = vmatpush2.bf16.msra.mxu0 %v3730_v33  ;;  %v1927_v33 = vlaneseq }
 0x481   : > { %2199 = vmatprep.subr.bf16.mxu0 %v3738_v34 }
 0x482   : > { %v1928_v34 = vshrl.u32 %v1927_v33, 7 }
 0x484   : > { %2200 = vmatpush2.bf16.msra.mxu0 %v3736_v35  ;;  %v1933_v35 = vsub.s32 1, %v1928_v34 }
 0x485   : > { %2201 = vmatprep.subr.bf16.mxu0 %v3744_v36  ;;  %v1929_v36 = vsub.s32 0, %v1928_v34 }
 0x488   : > { %2202 = vmatpush2.bf16.msra.mxu0 %v3742_v37  ;;  %v1925_v37 = vld [vmem:[%s4627_s12] sm:$0x3] }
 0x489   : > { %2203 = vmatprep.subr.bf16.mxu0 %v3750_v38 }
 0x48c   : > { %2204 = vmatpush2.bf16.msra.mxu0 %v3748_v39  ;;  %v1934_v39 = vrot.slane %v1925_v37, %v1933_v35  ;;  %v3798_v35 = vld [vmem:[%s4629_s14 + $0x170] sm:$0xff]  }
 0x48d   : > { %2205 = vmatprep.subr.bf16.mxu0 %v3756_v7  ;;  %v2270_v7 = vld [vmem:[%s4628_s13 + $0x18] sm:$0xff] }
 0x490   : > { %2206 = vmatpush2.bf16.msra.mxu0 %v3754_v8  ;;  %v3775_v8 = vld [vmem:[%s4629_s14 + $0x20] sm:$0xff]  }
 0x491   : > { %2207 = vmatprep.subr.bf16.mxu0 %v3762_v11  ;;  %v3779_v11 = vld [vmem:[%s4629_s14 + $0x18] sm:$0xff]  }
 0x494   : > { %2208 = vmatpush2.bf16.msra.mxu0 %v3760_v12  ;;  %v3782_v12 = vld [vmem:[%s4629_s14 + $0x50] sm:$0xff]  }
 0x495   : > { %3406 = vmatprep.subr.bf16.mxu0 %v3772_v25  ;;  %v3799_v25 = vld [vmem:[%s4629_s14 + $0xc0] sm:$0xff]  }
 0x514   : > { %v3362_v40 = vpop.f32.mrf.mxu1 }
 0x516   : > { %v3363_v41 = vpop.f32.mrf.mxu1 }
 0x517   : > { %v3364_v43 = vadd.f32 %v3363_v41, %v3362_v40  ;;  %v1736_v44 = vpop.f32.mrf.mxu0  ;;  %v1930_v41 = vrot.slane %v1925_v37, %v1929_v36  ;;  %v3800_v37 = vld [vmem:[%s4629_s14 + $0x130] sm:$0xff]  }
 0x518   : > { %v3365_v45 = vpop.f32.mrf.mxu1 }
 0x519   : > { %v1697_v46 = vadd.f32 %v3364_v43, %v3133_v42  ;;  %v3543_v47 = vpop.f32.mrf.mxu0 }
 0x51a   : > { %v3366_v48 = vpop.f32.mrf.mxu1 }
 0x51b   : > { %v1737_v49 = vadd.f32 %v1736_v44, %v1697_v46  ;;  %v1739_v50 = vpop.f32.mrf.mxu0 }
 0x51d   : > { %v1742_v51 = vmax.f32 %v1737_v49, 0.0  ;;  %v3544_v52 = vpop.f32.mrf.mxu0 }
 0x51f   : > { %3545 = vmatprep.subr.mxu1 %v1742_v51 }
 0x520   : > { %3546 = vmatpush3.msra.mxu1 %v1742_v51 }
 0x521   : > { %3548 = vmatmul.mubr.msk.f32.vlgmr.msra.gmra.mxu1 %vm983_vm2, %v1744_v54  ;;  %2220 = vmatprep.subr.bf16.mxu1 %v3723_v53 }
 0x522   : > { %3550 = vmatprep.mubr.msk.f32.mxu1 %vm983_vm2, %v1745_v56  ;;  %2221 = vmatpush1.bf16.msra.mxu1 %v3721_v55 }
 0x523   : > { %2222 = vmatprep.subr.bf16.mxu1 %v3729_v57 }
 0x525   : > { %3551 = vmatmul.mubr.msk.f32.gmra.mxu1 %vm983_vm2, %v1746_v58 }
 0x526   : > { %3553 = vmatprep.mubr.msk.f32.mxu1 %vm983_vm2, %v1747_v60  ;;  %2223 = vmatpush1.bf16.msra.mxu1 %v3727_v59  ;;  %v3766_v59 = vld [vmem:[%s4629_s14 + $0x78] sm:$0xff]  }
 0x527   : > { %2224 = vmatprep.subr.bf16.mxu1 %v3735_v61  ;;  %v2267_v61 = vld [vmem:[%s4628_s13] sm:$0xff] }
 0x529   : > { %3554 = vmatmul.mubr.msk.f32.gmra.mxu1 %vm983_vm2, %v1748_v62  ;;  %v3767_v62 = vld [vmem:[%s4629_s14 + $0x38] sm:$0xff]  }
 0x52a   : > { %2225 = vmatpush1.bf16.msra.mxu1 %v3733_v63  ;;  %2252 = vmatprep.mubr.bf16.mxu1 %v3983_v15  ;;  %v3768_v63 = vld [vmem:[%s4629_s14 + $0x70] sm:$0xff]   ;;  %v3786_v15 = vld [vmem:[%s4629_s14 + $0x48] sm:$0xff]  }
 0x52b   : > { %2226 = vmatprep.subr.bf16.mxu1 %v3741_v1  ;;  %v2268_v1 = vld [vmem:[%s4628_s13 + $0x8] sm:$0xff] }
 0x52e   : > { %2227 = vmatpush1.bf16.msra.mxu1 %v3739_v2  ;;  %v3769_v2 = vld [vmem:[%s4629_s14 + $0x30] sm:$0xff]  }
 0x52f   : > { %2228 = vmatprep.subr.bf16.mxu1 %v3747_v3  ;;  %v3770_v3 = vld [vmem:[%s4629_s14 + $0x68] sm:$0xff]  }
 0x532   : > { %2229 = vmatpush1.bf16.msra.mxu1 %v3745_v4  ;;  %v2269_v4 = vld [vmem:[%s4628_s13 + $0x10] sm:$0xff] }
 0x533   : > { %2230 = vmatprep.subr.bf16.mxu1 %v3753_v5  ;;  %v3771_v5 = vld [vmem:[%s4629_s14 + $0x28] sm:$0xff]  }
 0x536   : > { %2231 = vmatpush1.bf16.msra.mxu1 %v3751_v6  ;;  %v3774_v6 = vld [vmem:[%s4629_s14 + $0x60] sm:$0xff]  }
 0x537   : > { %2232 = vmatprep.subr.bf16.mxu1 %v3759_v9  ;;  %v3778_v9 = vld [vmem:[%s4629_s14 + $0x58] sm:$0xff]  }
 0x53a   : > { %2233 = vmatpush1.bf16.msra.mxu1 %v3757_v10  ;;  %v2271_v10 = vld [vmem:[%s4628_s13 + $0x20] sm:$0xff] }
 0x53b   : > { %2234 = vmatprep.subr.bf16.mxu1 %v3765_v13  ;;  %v2272_v13 = vld [vmem:[%s4628_s13 + $0x28] sm:$0xff] }
 0x53e   : > { %2235 = vmatpush1.bf16.msra.mxu1 %v3763_v14  ;;  %v3783_v14 = vld [vmem:[%s4629_s14 + $0x10] sm:$0xff]  }
 0x5e1   : > { %v3549_v16 = vpop.f32.mrf.mxu1 }
 0x5e3   : > { %v1833_v17 = vpop.f32.mrf.mxu1 }
 0x5e4   : > { %v1874_v21 = vpack.c.bf16 %v3549_v16, %v1833_v17  ;;  %v3788_v16 = vld [vmem:[%s4629_s14 + $0xd8] sm:$0xff]  }
 0x5e5   : > { %v3552_v18 = vpop.f32.mrf.mxu1  ;;  %v3789_v17 = vld [vmem:[%s4629_s14 + $0x98] sm:$0xff]  }
 0x5e7   : > { %v1843_v19 = vpop.f32.mrf.mxu1 }
 0x5e8   : > { %v1875_v20 = vpack.c.bf16 %v3552_v18, %v1843_v19  ;;  %v3790_v18 = vld [vmem:[%s4629_s14 + $0x40] sm:$0xff]  }
 0x5e9   : > { %v3555_v22 = vpop.f32.mrf.mxu1  ;;  %v3791_v19 = vld [vmem:[%s4629_s14] sm:$0xff]  }
 0x5ea   : > { %2209 = vmatprep.mubr.bf16.mxu0 %v1875_v20  ;;  %v3792_v20 = vld [vmem:[%s4629_s14 + $0xd0] sm:$0xff]  }
 0x5eb   : > { %v1853_v23 = vpop.f32.mrf.mxu1  ;;  %2210 = vmatmul.mubr.bf16.vlgmr.msra.gmra.mxu0 %v1874_v21  ;;  %v3793_v21 = vld [vmem:[%s4629_s14 + $0x90] sm:$0xff]  }
 0x5ec   : > { %v1876_v24 = vpack.c.bf16 %v3555_v22, %v1853_v23  ;;  %3407 = vmatpush3.bf16.msra.mxu0 %v3773_v26  ;;  %v3794_v22 = vld [vmem:[%s4629_s14 + $0x178] sm:$0xff]   ;;  %v3795_v23 = vld [vmem:[%s4629_s14 + $0xc8] sm:$0xff]   ;;  %v3801_v26 = vld [vmem:[%s4629_s14 + $0x80] sm:$0xff]  }
 0x5ed   : > { %3408 = vmatprep.subr.bf16.mxu0 %v3776_v27 }
 0x5ee   : > { %2253 = vmatmul.mubr.bf16.vlgmr.msra.gmra.mxu1 %v1876_v24  ;;  %v3797_v24 = vld [vmem:[%s4629_s14 + $0x88] sm:$0xff]  }
 0x5ef   : > { %2355 = vmatprep.mubr.f32.mxu1 %v3981_v0 }
 0x5f0   : > { %3409 = vmatpush3.bf16.msra.mxu0 %v3777_v28 }
 0x5f1   : > { %3410 = vmatprep.subr.bf16.mxu0 %v3780_v29 }
 0x5f4   : > { %3411 = vmatpush3.bf16.msra.mxu0 %v3781_v30 }
 0x5f5   : > { %3412 = vmatprep.subr.bf16.mxu0 %v3784_v31 }
 0x5f8   : > { %3413 = vmatpush3.bf16.msra.mxu0 %v3785_v32  ;;  %v3796_v32 = vld [vmem:[%s4629_s14 + $0x138] sm:$0xff]  }
 0x5f9   : > { %3414 = vmatprep.subr.bf16.mxu0 %v3788_v16 }
 0x5fc   : > { %3415 = vmatpush3.bf16.msra.mxu0 %v3789_v17 }
 0x5fd   : > { %3416 = vmatprep.subr.bf16.mxu0 %v3792_v20 }
 0x600   : > { %3417 = vmatpush3.bf16.msra.mxu0 %v3793_v21 }
 0x601   : > { %3418 = vmatprep.subr.bf16.mxu0 %v3795_v23 }
 0x604   : > { %3419 = vmatpush3.bf16.msra.mxu0 %v3797_v24 }
 0x605   : > { %3420 = vmatprep.subr.bf16.mxu0 %v3799_v25 }
 0x608   : > { %3421 = vmatpush3.bf16.msra.mxu0 %v3801_v26 }
 0x6ab   : > { %v2211_v38 = vpop.f32.mrf.mxu0 }
 0x6ac   : > { %v2212_v48 = vadd.f32 %v2211_v38, %v1930_v41 }
 0x6ad   : > { %v2213_v40 = vpop.f32.mrf.mxu0 }
 0x6ae   : > { %v2254_v42 = vpop.f32.mrf.mxu1  ;;  %v2214_v46 = vadd.f32 %v2213_v40, %v1934_v39 }
 0x6af   : > { %v2215_v43 = vpop.f32.mrf.mxu0  ;;  %v2255_v55 = vadd.f32 %v2254_v42, %v2212_v48  ;;  %v3806_v48 = vld [vmem:[%s4629_s14 + $0x158] sm:$0xff]  }
 0x6b0   : > { %v2216_v44 = vadd.f32 %v2215_v43, %v1930_v41  ;;  %v2256_v45 = vpop.f32.mrf.mxu1  ;;  %v3803_v43 = vld [vmem:[%s4629_s14 + $0x128] sm:$0xff]  }
 0x6b1   : > { %v2217_v47 = vpop.f32.mrf.mxu0  ;;  %v2257_v53 = vadd.f32 %v2256_v45, %v2214_v46  ;;  %v2263_v60 = vmax.f32 %v2255_v55, 0.0  ;;  %v3810_v55 = vld [vmem:[%s4629_s14 + $0x148] sm:$0xff]  }
 0x6b2   : > { %v2218_v49 = vadd.f32 %v2217_v47, %v1934_v39  ;;  %v2258_v50 = vpop.f32.mrf.mxu1  ;;  %v3802_v39 = vld [vmem:[%s4629_s14 + $0x168] sm:$0xff]   ;;  %v3805_v47 = vld [vmem:[%s4629_s14 + $0x120] sm:$0xff]  }
 0x6b3   : > { %v2259_v51 = vadd.f32 %v2258_v50, %v2216_v44  ;;  %v2264_v58 = vmax.f32 %v2257_v53, 0.0  ;;  %v3804_v44 = vld [vmem:[%s4629_s14 + $0x160] sm:$0xff]   ;;  %v3808_v53 = vld [vmem:[%s4629_s14 + $0x150] sm:$0xff]  }
 0x6b4   : > { %v2260_v52 = vpop.f32.mrf.mxu1 }
 0x6b5   : > { %v2261_v54 = vadd.f32 %v2260_v52, %v2218_v49  ;;  %v2265_v57 = vmax.f32 %v2259_v51, 0.0  ;;  %v3807_v51 = vld [vmem:[%s4629_s14 + $0x118] sm:$0xff]  }
 0x6b7   : > { %v2266_v56 = vmax.f32 %v2261_v54, 0.0  ;;  %v3809_v54 = vld [vmem:[%s4629_s14 + $0x110] sm:$0xff]  }
 0x6b9   : > { %2319 = vmatprep.subr.mxu1 %v2266_v56  ;;  %v3811_v56 = vld [vmem:[%s4629_s14 + $0x108] sm:$0xff]  }
 0x6ba   : > { %2320 = vmatpush1.msra.mxu1 %v2265_v57  ;;  %v3812_v57 = vld [vmem:[%s4629_s14 + $0x140] sm:$0xff]  }
 0x6bb   : > { %2321 = vmatprep.subr.mxu1 %v2264_v58  ;;  %v3813_v58 = vld [vmem:[%s4629_s14 + $0x100] sm:$0xff]  }
 0x6bc   : > { %2322 = vmatpush1.msra.mxu1 %v2263_v60 }
 0x6bd   : > { %3212 = vmatmul.mubr.msk.f32.vlgmr.msra.gmra.mxu1 %vm601_vm1, %v2267_v61  ;;  %3384 = vmatprep.subr.bf16.mxu1 %v3766_v59 }
 0x6be   : > { %2361 = vmatprep.mubr.f32.mxu1 %v3981_v0  ;;  %3385 = vmatpush3.bf16.msra.mxu1 %v3767_v62 }
 0x6bf   : > { %3386 = vmatprep.subr.bf16.mxu1 %v3768_v63 }
 0x6c1   : > { %3213 = vmatmul.mubr.msk.f32.gmra.mxu1 %vm601_vm1, %v2268_v1 }
 0x6c2   : > { %2367 = vmatprep.mubr.f32.mxu1 %v3981_v0  ;;  %3387 = vmatpush3.bf16.msra.mxu1 %v3769_v2 }
 0x6c3   : > { %3388 = vmatprep.subr.bf16.mxu1 %v3770_v3 }
 0x6c5   : > { %3214 = vmatmul.mubr.msk.f32.gmra.mxu1 %vm601_vm1, %v2269_v4  ;;  %v3218_v4 = vld [vmem:[%s4630_s15] ss:$0 sm:$0xff] }
 0x6c6   : > { %2373 = vmatprep.mubr.f32.mxu1 %v3981_v0  ;;  %3389 = vmatpush3.bf16.msra.mxu1 %v3771_v5 }
 0x6c7   : > { %3390 = vmatprep.subr.bf16.mxu1 %v3774_v6 }
 0x6c9   : > { %3215 = vmatmul.mubr.msk.f32.gmra.mxu1 %vm601_vm1, %v2270_v7 }
 0x6ca   : > { %2379 = vmatprep.mubr.f32.mxu1 %v3981_v0  ;;  %3391 = vmatpush3.bf16.msra.mxu1 %v3775_v8 }
 0x6cb   : > { %3392 = vmatprep.subr.bf16.mxu1 %v3778_v9 }
 0x6cd   : > { %3216 = vmatmul.mubr.msk.f32.gmra.mxu1 %vm601_vm1, %v2271_v10 }
 0x6ce   : > { %2385 = vmatprep.mubr.f32.mxu1 %v3981_v0  ;;  %3393 = vmatpush3.bf16.msra.mxu1 %v3779_v11  ;;  %v3787_v0 = vld [vmem:[%s4629_s14 + $0x8] sm:$0xff]  }
 0x6cf   : > { %3394 = vmatprep.subr.bf16.mxu1 %v3782_v12 }
 0x6d1   : > { %3217 = vmatmul.mubr.msk.f32.gmra.mxu1 %vm601_vm1, %v2272_v13 }
 0x6d2   : > { %3395 = vmatpush3.bf16.msra.mxu1 %v3783_v14 }
 0x6d3   : > { %3396 = vmatprep.subr.bf16.mxu1 %v3786_v15 }
 0x6d6   : > { %3397 = vmatpush3.bf16.msra.mxu1 %v3787_v0 }
 0x6d7   : > { %3398 = vmatprep.subr.bf16.mxu1 %v3790_v18 }
 0x6da   : > { %3399 = vmatpush3.bf16.msra.mxu1 %v3791_v19 }
 0x6db   : > { %3428 = vmatprep.subr.bf16.mxu1 %v3794_v22 }
 0x77d   : > { %v2357_v27 = vpop.f32.mrf.mxu1 }
 0x77f   : > { %v2359_v28 = vpop.f32.mrf.mxu1 }
 0x781   : > { %v2363_v29 = vpop.f32.mrf.mxu1 }
 0x782   : > { %v2416_v33 = vpack.c.bf16 %v2363_v29, %v2357_v27 }
 0x783   : > { %v2365_v30 = vpop.f32.mrf.mxu1 }
 0x784   : > { %v2417_v31 = vpack.c.bf16 %v2365_v30, %v2359_v28 }
 0x785   : > { %v2369_v34 = vpop.f32.mrf.mxu1 }
 0x786   : > { %2845 = vmatprep.mubr.bf16.mxu1 %v2417_v31 }
 0x787   : > { %v2371_v36 = vpop.f32.mrf.mxu1  ;;  %2846 = vmatmul.mubr.bf16.vlgmr.msra.gmra.mxu1 %v2416_v33 }
 0x788   : > { %3429 = vmatpush3.bf16.msra.mxu1 %v3796_v32 }
 0x789   : > { %v2375_v38 = vpop.f32.mrf.mxu1  ;;  %3430 = vmatprep.subr.bf16.mxu1 %v3798_v35 }
 0x78a   : > { %v2418_v40 = vpack.c.bf16 %v2375_v38, %v2369_v34 }
 0x78b   : > { %v2377_v41 = vpop.f32.mrf.mxu1 }
 0x78c   : > { %v2419_v42 = vpack.c.bf16 %v2377_v41, %v2371_v36  ;;  %3431 = vmatpush3.bf16.msra.mxu1 %v3800_v37 }
 0x78d   : > { %3432 = vmatprep.subr.bf16.mxu1 %v3802_v39  ;;  %v2381_v45 = vpop.f32.mrf.mxu1 }
 0x78e   : > { %2886 = vmatprep.mubr.bf16.mxu0 %v2419_v42 }
 0x78f   : > { %2887 = vmatmul.mubr.bf16.vlgmr.msra.gmra.mxu0 %v2418_v40  ;;  %v2383_v46 = vpop.f32.mrf.mxu1 }
 0x790   : > { %3433 = vmatpush3.bf16.msra.mxu1 %v3803_v43 }
 0x791   : > { %3434 = vmatprep.subr.bf16.mxu1 %v3804_v44  ;;  %v2387_v49 = vpop.f32.mrf.mxu1 }
 0x792   : > { %v2420_v59 = vpack.c.bf16 %v2387_v49, %v2381_v45 }
 0x793   : > { %v2389_v50 = vpop.f32.mrf.mxu1 }
 0x794   : > { %3435 = vmatpush3.bf16.msra.mxu1 %v3805_v47  ;;  %v2421_v52 = vpack.c.bf16 %v2389_v50, %v2383_v46 }
 0x795   : > { %3436 = vmatprep.subr.bf16.mxu1 %v3806_v48 }
 0x796   : > { %2927 = vmatprep.mubr.bf16.mxu1 %v2421_v52 }
 0x798   : > { %3437 = vmatpush3.bf16.msra.mxu1 %v3807_v51 }
 0x799   : > { %3438 = vmatprep.subr.bf16.mxu1 %v3808_v53 }
 0x79c   : > { %3439 = vmatpush3.bf16.msra.mxu1 %v3809_v54 }
 0x79d   : > { %3440 = vmatprep.subr.bf16.mxu1 %v3810_v55 }
 0x7a0   : > { %3441 = vmatpush3.bf16.msra.mxu1 %v3811_v56 }
 0x7a1   : > { %3442 = vmatprep.subr.bf16.mxu1 %v3812_v57 }
 0x7a4   : > { %3443 = vmatpush3.bf16.msra.mxu1 %v3813_v58 }
 0x7a7   : > { %2928 = vmatmul.mubr.bf16.vlgmr.msra.gmra.mxu1 %v2420_v59 }
 0x847   : > { %v3400_v60 = vpop.f32.mrf.mxu1 }
 0x849   : > { %v3401_v62 = vpop.f32.mrf.mxu1 }
 0x84a   : > { %v3402_v3 = vadd.f32 %v3401_v62, %v3400_v60 }
 0x84b   : > { %v3403_v1 = vpop.f32.mrf.mxu1 }
 0x84c   : > { %v2848_v9 = vadd.f32 %v3402_v3, %v3218_v4 }
 0x84d   : > { %v3404_v5 = vpop.f32.mrf.mxu1 }
 0x84e   : > { %v3405_v10 = vadd.f32 %v3404_v5, %v3403_v1 }
 0x84f   : > { %v3422_v61 = vpop.f32.mrf.mxu0 }
 0x850   : > { %v2851_v0 = vadd.f32 %v3405_v10, %v3218_v4 }
 0x851   : > { %v3423_v63 = vpop.f32.mrf.mxu0 }
 0x852   : > { %v3424_v6 = vadd.f32 %v3423_v63, %v3422_v61 }
 0x853   : > { %v3425_v2 = vpop.f32.mrf.mxu0 }
 0x854   : > { %v2889_v12 = vadd.f32 %v3424_v6, %v2848_v9 }
 0x855   : > { %v3426_v7 = vpop.f32.mrf.mxu0 }
 0x856   : > { %v3427_v13 = vadd.f32 %v3426_v7, %v3425_v2 }
 0x858   : > { %v2892_v18 = vadd.f32 %v3427_v13, %v2851_v0 }
 0x867   : > { %v3444_v8 = vpop.f32.mrf.mxu1 }
 0x869   : > { %v3445_v11 = vpop.f32.mrf.mxu1 }
 0x86a   : > { %v3446_v14 = vadd.f32 %v3445_v11, %v3444_v8 }
 0x86b   : > { %v3447_v15 = vpop.f32.mrf.mxu1 }
 0x86c   : > { %v2930_v16 = vadd.f32 %v3446_v14, %v2889_v12 }
 0x86d   : > { %v3448_v17 = vpop.f32.mrf.mxu1 }
 0x86e   : > { %v2936_v19 = vsub.f32 0.0, %v2930_v16  ;;  %v3449_v20 = vadd.f32 %v3448_v17, %v3447_v15 }
 0x870   : > { %v2938_v21 = vmul.f32 1.442695, %v2936_v19  ;;  %v2933_v22 = vadd.f32 %v3449_v20, %v2892_v18 }
 0x872   : > { %3814 = vpow2.f32 %v2938_v21  ;;  %v2937_v23 = vsub.f32 0.0, %v2933_v22 }
 0x874   : > { %v2940_v24 = vmul.f32 1.442695, %v2937_v23 }
 0x876   : > { %3816 = vpow2.f32 %v2940_v24 }
 0x87f   : > { %v3815_v25 = vpop.eup %3814 }
 0x880   : > { %v2942_v26 = vadd.f32 1.0, %v3815_v25 }
 0x882   : > { %3818 = vrcp.f32 %v2942_v26 }
 0x883   : > { %v3817_v27 = vpop.eup %3816 }
 0x884   : > { %v2943_v28 = vadd.f32 1.0, %v3817_v27 }
 0x886   : > { %3820 = vrcp.f32 %v2943_v28 }
 0x88f   : > { %v3819_v29 = vpop.eup %3818 }
 0x890   : > { %v2946_v30 = vmin.f32 %v3819_v29, 1.0 }
 0x892   : > { %2948 = vst [vmem:[%s594_s20] sm:$0xff] %v2946_v30 }
 0x893   : > { %v3821_v31 = vpop.eup %3820 }
 0x894   : > { %v2947_v32 = vmin.f32 %v3821_v31, 1.0 }
 0x896   : > { %2949 = vst [vmem:[%s594_s20 + $0x8] sm:$0xff] %v2947_v32 }
 0x897 PF: > { %s29_s21 = sadd.s32 1, %s3970_s21  }
 0x898   : > { %p26_p0 = scmp.ge.s32.totalorder %s29_s21, 4  }
 0x89a   :  { %28 = sbr.rel (!%p26_p0) target bundleno = 6 (0x6), region = 135 }
 0x89f   :  { %2971 = vsyncpa [#allocation4], 1 }
 0x8a0   :  { %2973 = vsyncpa [#allocation4 + $0x1], 1 }
 0x8a1   :  { %2974 = vsyncpa [#allocation6], 1 }
 0x8a2   :  { %2975 = vsyncpa [#allocation9], 1 }

</bundles_post_ra>
